<compile_context>
chip_gen: v5e
topology: v5e:2x2
jax: 0.10.0
libtpu: 0.0.40
codegen_flags: <defaults>
</compile_context>

<pallas_src>
import functools

import jax
import jax.numpy as jnp
from jax.experimental import pallas as pl
from jax.experimental.pallas import tpu as pltpu

BN_EPS = 1e-5
LANE = 128
ROW_ALIGN = 16   # sublane-pack alignment that is safe for both f32 and bf16


def _round_up(n, m):
    return ((n + m - 1) // m) * m


def _tile_rows(total, target, align=ROW_ALIGN):
    """Row-tile choice: the full extent if it fits the target (a full-dim
    block is always legal), otherwise the target rounded to `align` with a
    pl.cdiv grid (final block is masked / its OOB writes are dropped)."""
    if total <= target:
        return total
    return max(align, (target // align) * align)


# --------------------------------------------------------------------------
# Pass 1: h1 = x @ w1 (stored in compute dtype), plus per-tile partial
# sum / sum-of-squares of h1 in f32 (rows >= nrows masked when needed).
# --------------------------------------------------------------------------
def _conv_stats_kernel(nrows, tr, masked, x_ref, w_ref, h_ref, s_ref, ss_ref):
    h = jnp.dot(x_ref[...], w_ref[...], preferred_element_type=jnp.float32)
    h_ref[...] = h.astype(h_ref.dtype)
    if masked:
        row = pl.program_id(0) * tr + jax.lax.broadcasted_iota(jnp.int32, h.shape, 0)
        h = jnp.where(row < nrows, h, 0.0)
    s_ref[...] = jnp.sum(h, axis=0, keepdims=True)
    ss_ref[...] = jnp.sum(h * h, axis=0, keepdims=True)


# --------------------------------------------------------------------------
# Pass 2: a = PReLU(h1*scale1 + shift1) (f32 math); h2 = a @ w2 (stored in
# compute dtype); partial f32 stats of h2 (masked rows excluded).
# --------------------------------------------------------------------------
def _bn_act_conv_stats_kernel(dt, nrows, tr, masked, scale_ref, shift_ref,
                              alpha_ref, h1_ref, w_ref, h2_ref, s_ref, ss_ref):
    f32 = jnp.float32
    a = h1_ref[...].astype(f32) * scale_ref[...] + shift_ref[...]
    a = jnp.where(a >= 0.0, a, alpha_ref[...] * a)
    h2 = jnp.dot(a.astype(dt), w_ref[...], preferred_element_type=f32)
    h2_ref[...] = h2.astype(h2_ref.dtype)
    if masked:
        row = pl.program_id(0) * tr + jax.lax.broadcasted_iota(jnp.int32, h2.shape, 0)
        h2 = jnp.where(row < nrows, h2, 0.0)
    s_ref[...] = jnp.sum(h2, axis=0, keepdims=True)
    ss_ref[...] = jnp.sum(h2 * h2, axis=0, keepdims=True)


# --------------------------------------------------------------------------
# Pass 3: y = PReLU(PReLU(h2*scale2 + shift2) + residual); MaxPool1d(3).
# The 3-wide pooling window lives in the lane axis of the block
# ((tp, 3*C) tiles); the three positions are vreg-aligned lane slices and are
# reduced with jnp.maximum in-register -> one dense store per output tile.
# --------------------------------------------------------------------------
def _bn_act_res_act_pool_kernel(use_res_conv, cin_p, cout_p,
                                scale_ref, shift_ref, a2_ref, a3_ref,
                                h2_ref, x_ref, *rest):
    if use_res_conv:
        wr_ref, out_ref = rest
    else:
        (out_ref,) = rest
    f32 = jnp.float32
    scale = scale_ref[...]
    shift = shift_ref[...]
    a2 = a2_ref[...]
    a3 = a3_ref[...]

    def position(p):
        g = h2_ref[:, p * cout_p:(p + 1) * cout_p].astype(f32) * scale + shift
        g = jnp.where(g >= 0.0, g, a2 * g)
        xs = x_ref[:, p * cin_p:(p + 1) * cin_p]
        if use_res_conv:
            res = jnp.dot(xs, wr_ref[...], preferred_element_type=f32)
        else:
            res = xs.astype(f32)            # identity residual: no matmul
        y = g + res
        return jnp.where(y >= 0.0, y, a3 * y)

    out_ref[...] = jnp.maximum(jnp.maximum(position(0), position(1)), position(2))


# --------------------------------------------------------------------------
# Parameters (PyTorch default-style init, stored channels-last: conv == x @ W)
# --------------------------------------------------------------------------
def init_resnet_block_params(key, in_dims, out_dims):
    k1, k2, k3 = jax.random.split(key, 3)

    def conv_w(k, ci, co):
        bound = 1.0 / (ci ** 0.5)
        return jax.random.uniform(k, (ci, co), jnp.float32, -bound, bound)

    params = {
        "w1": conv_w(k1, in_dims, out_dims),
        "g1": jnp.ones((out_dims,), jnp.float32),
        "b1": jnp.zeros((out_dims,), jnp.float32),
        "a1": jnp.float32(0.25),
        "w2": conv_w(k2, out_dims, out_dims),
        "g2": jnp.ones((out_dims,), jnp.float32),
        "b2": jnp.zeros((out_dims,), jnp.float32),
        "a2": jnp.float32(0.25),
        "a3": jnp.float32(0.25),
    }
    if in_dims != out_dims:
        params["wr"] = conv_w(k3, in_dims, out_dims)   # residual 1x1 conv
    return params


# --------------------------------------------------------------------------
# Forward wrapper
# --------------------------------------------------------------------------
def resnet_block_forward(x_ncl, params, *, compute_dtype=jnp.bfloat16,
                         row_tile_target=1024, pool_tile_target=256,
                         vmem_limit_bytes=48 * 1024 * 1024):
    """x_ncl: (B, Cin, T) like the PyTorch module; returns (B, Cout, T_out).

    compute_dtype: bf16 (default) halves intermediate HBM traffic and uses
    native bf16 MXU passes; pass jnp.float32 for strict f32 parity.
    On v5e/v6e (128 MiB VMEM) row_tile_target/vmem_limit_bytes may be raised
    further; the defaults are sized to stay comfortable on v7x (64 MiB)."""
    f32 = jnp.float32
    dt = compute_dtype

    B, Cin, T = x_ncl.shape
    Cout = params["w1"].shape[1]
    use_res_conv = Cin != Cout
    t_out = (T - 3) // 3 + 1            # MaxPool1d(kernel=3, stride=3)
    assert t_out >= 1, "T too small for MaxPool1d(3)"

    Cin_p = _round_up(Cin, LANE)
    Cout_p = _round_up(Cout, LANE)
    R = B * T

    # channels-last, channel-padded activations in compute dtype (single
    # transpose+cast+pad materialization).
    x2d = jnp.transpose(x_ncl, (0, 2, 1)).reshape(R, Cin).astype(dt)
    x2d = jnp.pad(x2d, ((0, 0), (0, Cin_p - Cin)))

    def pad2(w, rows, cols):
        w = w.astype(dt)
        return jnp.pad(w, ((0, rows - w.shape[0]), (0, cols - w.shape[1])))

    def pad_row(v, cols):
        v = v.astype(f32).reshape(1, -1)
        return jnp.pad(v, ((0, 0), (0, cols - v.shape[1])))

    w1p = pad2(params["w1"], Cin_p, Cout_p)
    w2p = pad2(params["w2"], Cout_p, Cout_p)
    g1 = pad_row(params["g1"], Cout_p)
    b1 = pad_row(params["b1"], Cout_p)
    g2 = pad_row(params["g2"], Cout_p)
    b2 = pad_row(params["b2"], Cout_p)
    a1 = jnp.full((1, Cout_p), params["a1"], f32)
    a2 = jnp.full((1, Cout_p), params["a2"], f32)
    a3 = jnp.full((1, Cout_p), params["a3"], f32)

    tr = _tile_rows(R, row_tile_target)
    n_rt = pl.cdiv(R, tr)
    masked_rows = (R % tr) != 0

    cp_rows = pltpu.CompilerParams(dimension_semantics=("parallel",),
                                   vmem_limit_bytes=vmem_limit_bytes)

    stat_spec = pl.BlockSpec((None, 1, Cout_p), lambda i: (i, 0, 0))
    stat_shape = jax.ShapeDtypeStruct((n_rt, 1, Cout_p), f32)

    # ---- pass 1: conv1 + partial BN1 stats -------------------------------
    h1, ps1, pss1 = pl.pallas_call(
        functools.partial(_conv_stats_kernel, R, tr, masked_rows),
        grid=(n_rt,),
        in_specs=[pl.BlockSpec((tr, Cin_p), lambda i: (i, 0)),
                  pl.BlockSpec((Cin_p, Cout_p), lambda i: (0, 0))],
        out_specs=[pl.BlockSpec((tr, Cout_p), lambda i: (i, 0)),
                   stat_spec, stat_spec],
        out_shape=[jax.ShapeDtypeStruct((R, Cout_p), dt),
                   stat_shape, stat_shape],
        compiler_params=cp_rows,
    )(x2d, w1p)

    def scale_shift(psum, psumsq, gamma, beta):
        n = jnp.float32(R)
        s = jnp.sum(psum, axis=0)            # (1, Cout_p)
        ss = jnp.sum(psumsq, axis=0)
        mean = s / n
        var = jnp.maximum(ss / n - mean * mean, 0.0)   # biased variance
        scale = gamma * jax.lax.rsqrt(var + BN_EPS)
        shift = beta - mean * scale
        return scale, shift

    scale1, shift1 = scale_shift(ps1, pss1, g1, b1)

    # ---- pass 2: BN1-apply + PReLU + conv2 + partial BN2 stats -----------
    h2, ps2, pss2 = pl.pallas_call(
        functools.partial(_bn_act_conv_stats_kernel, dt, R, tr, masked_rows),
        grid=(n_rt,),
        in_specs=[pl.BlockSpec((1, Cout_p), lambda i: (0, 0)),   # scale1
                  pl.BlockSpec((1, Cout_p), lambda i: (0, 0)),   # shift1
                  pl.BlockSpec((1, Cout_p), lambda i: (0, 0)),   # alpha1
                  pl.BlockSpec((tr, Cout_p), lambda i: (i, 0)),  # h1
                  pl.BlockSpec((Cout_p, Cout_p), lambda i: (0, 0))],  # w2
        out_specs=[pl.BlockSpec((tr, Cout_p), lambda i: (i, 0)),
                   stat_spec, stat_spec],
        out_shape=[jax.ShapeDtypeStruct((R, Cout_p), dt),
                   stat_shape, stat_shape],
        compiler_params=cp_rows,
    )(scale1, shift1, a1, h1, w2p)

    scale2, shift2 = scale_shift(ps2, pss2, g2, b2)

    # ---- pass 3: BN2-apply + PReLU + residual + PReLU + MaxPool1d(3) -----
    # View the row axis as (B, t_out, 3): the 3-wide pooling window folds
    # into the lane axis, so each grid step reads one dense (tp, 3*C) tile.
    T_use = 3 * t_out
    if T_use == T:          # pure relabel of the contiguous buffer (no copy)
        h2v = h2.reshape(B, t_out, 3 * Cout_p)
        xv = x2d.reshape(B, t_out, 3 * Cin_p)
    else:                   # trailing (T - T_use) steps are unused by pooling
        h2v = h2.reshape(B, T, Cout_p)[:, :T_use, :].reshape(B, t_out, 3 * Cout_p)
        xv = x2d.reshape(B, T, Cin_p)[:, :T_use, :].reshape(B, t_out, 3 * Cin_p)

    tp = _tile_rows(t_out, pool_tile_target)
    n_pt = pl.cdiv(t_out, tp)

    row_spec = pl.BlockSpec((1, Cout_p), lambda b, t: (0, 0))
    ins = [scale2, shift2, a2, a3, h2v, xv]
    in_specs = [row_spec, row_spec, row_spec, row_spec,
                pl.BlockSpec((None, tp, 3 * Cout_p), lambda b, t: (b, t, 0)),
                pl.BlockSpec((None, tp, 3 * Cin_p), lambda b, t: (b, t, 0))]
    if use_res_conv:
        wrp = pad2(params["wr"], Cin_p, Cout_p)
        ins.append(wrp)
        in_specs.append(pl.BlockSpec((Cin_p, Cout_p), lambda b, t: (0, 0)))

    out = pl.pallas_call(
        functools.partial(_bn_act_res_act_pool_kernel,
                          use_res_conv, Cin_p, Cout_p),
        grid=(B, n_pt),
        in_specs=in_specs,
        out_specs=pl.BlockSpec((None, tp, Cout_p), lambda b, t: (b, t, 0)),
        out_shape=jax.ShapeDtypeStruct((B, t_out, Cout_p), f32),
        compiler_params=pltpu.CompilerParams(
            dimension_semantics=("parallel", "parallel"),
            vmem_limit_bytes=vmem_limit_bytes),
    )(*ins)

    # drop channel padding, back to PyTorch (B, Cout, T_out) layout
    return jnp.transpose(out[:, :, :Cout], (0, 2, 1))


# --------------------------------------------------------------------------
# Plain-JAX reference of the PyTorch forward (training-mode BatchNorm)
# --------------------------------------------------------------------------
def _reference_forward(x_ncl, params):
    x = jnp.transpose(x_ncl, (0, 2, 1)).astype(jnp.float32)   # (B, T, Cin)
    dot = functools.partial(jnp.dot, precision=jax.lax.Precision.HIGHEST)

    def bn(h, g, b):
        m = jnp.mean(h, axis=(0, 1), keepdims=True)
        v = jnp.mean((h - m) ** 2, axis=(0, 1), keepdims=True)
        return (h - m) * jax.lax.rsqrt(v + BN_EPS) * g + b

    def prelu(h, a):
        return jnp.where(h >= 0.0, h, a * h)

    h = prelu(bn(dot(x, params["w1"]), params["g1"], params["b1"]), params["a1"])
    h = prelu(bn(dot(h, params["w2"]), params["g2"], params["b2"]), params["a2"])
    res = dot(x, params["wr"]) if "wr" in params else x
    h = prelu(h + res, params["a3"])
    B, T, Co = h.shape
    t_out = (T - 3) // 3 + 1
    h = h[:, : t_out * 3, :].reshape(B, t_out, 3, Co).max(axis=2)
    return jnp.transpose(h, (0, 2, 1))


if __name__ == "__main__":
    key = jax.random.PRNGKey(0)
    # (B, Cin, Cout, T, compute_dtype, tol):
    #  1) residual-conv path, f32, uneven row tiles (exercises cdiv masking)
    #  2) identity-residual path, f32
    #  3) bf16 intermediates (perf config), odd sizes, loose tolerance
    configs = [
        (2, 8, 16, 768, jnp.float32, 2e-3),
        (2, 16, 16, 384, jnp.float32, 2e-3),
        (2, 8, 16, 378, jnp.bfloat16, 3e-1),
    ]

    for (B, Cin, Cout, T, dt, tol) in configs:
        key, kx, kp = jax.random.split(key, 3)
        x = jax.random.normal(kx, (B, Cin, T), jnp.float32)
        params = init_resnet_block_params(kp, Cin, Cout)

        y = jax.block_until_ready(
            resnet_block_forward(x, params, compute_dtype=dt))
        y_ref = jax.block_until_ready(_reference_forward(x, params))

        t_out = (T - 3) // 3 + 1
        assert y.shape == (B, Cout, t_out), y.shape
        err = float(jnp.max(jnp.abs(y - y_ref)))
        assert err < tol, f"max abs err {err} for config {(B, Cin, Cout, T, dt)}"

    print("KERNEL_OK")
</pallas_src>

<mosaic_0001>
module attributes {stable_mosaic.version = 11 : i64} {
  func.func @_conv_stats_kernel(%arg0: i32, %arg1: memref<1024x128xf32, #tpu.memory_space<vmem>>, %arg2: memref<128x128xf32, #tpu.memory_space<vmem>>, %arg3: memref<1024x128xf32, #tpu.memory_space<vmem>>, %arg4: memref<1x1x128xf32, #tpu.memory_space<vmem>>, %arg5: memref<1x1x128xf32, #tpu.memory_space<vmem>>) attributes {dimension_semantics = [#tpu.dimension_semantics<parallel>], iteration_bounds = array<i64: 2>, scalar_prefetch = 0 : i64, scratch_operands = 0 : i64, tpu.core_type = #tpu.core_type<tc>, window_params = [{transform_indices = @transform_0, window_bounds = array<i64: 1024, 128>}, {pipeline_mode = #tpu.pipeline_mode<synchronous>, transform_indices = @transform_1, window_bounds = array<i64: 128, 128>}, {transform_indices = @transform_2, window_bounds = array<i64: 1024, 128>}, {transform_indices = @transform_3, window_bounds = array<i64: 1, 1, 128>}, {transform_indices = @transform_4, window_bounds = array<i64: 1, 1, 128>}]} {
    %c0 = arith.constant 0 : index
    %c0_0 = arith.constant 0 : index
    %0 = vector.load %arg1[%c0, %c0_0] : memref<1024x128xf32, #tpu.memory_space<vmem>>, vector<1024x128xf32>
    %c0_1 = arith.constant 0 : index
    %c0_2 = arith.constant 0 : index
    %1 = vector.load %arg2[%c0_1, %c0_2] : memref<128x128xf32, #tpu.memory_space<vmem>>, vector<128x128xf32>
    %cst = arith.constant dense<0.000000e+00> : vector<1024x128xf32>
    %2 = tpu.matmul %0, %1, %cst {dimension_numbers = #tpu.dot_dimension_numbers<[1], [0], [0], [1], [0, 0, 1, 1], [], []>} : vector<1024x128xf32>, vector<128x128xf32>, vector<1024x128xf32> -> vector<1024x128xf32>
    %c0_3 = arith.constant 0 : index
    %c0_4 = arith.constant 0 : index
    %3 = vector.load %arg3[%c0_3, %c0_4] : memref<1024x128xf32, #tpu.memory_space<vmem>>, vector<1024x128xf32>
    tpu.vector_store %arg3[%c0_3, %c0_4], %2 {strides = array<i32>} : memref<1024x128xf32, #tpu.memory_space<vmem>>, vector<1024x128xf32>,
    %c1024_i32 = arith.constant 1024 : i32
    %4 = arith.muli %arg0, %c1024_i32 : i32
    %5 = tpu.iota {dimensions = array<i32: 0>} : vector<1024x128xi32>
    %6 = vector.broadcast %4 : i32 to vector<1024x128xi32>
    %7 = arith.addi %6, %5 : vector<1024x128xi32>
    %c1536_i32 = arith.constant 1536 : i32
    %8 = vector.broadcast %c1536_i32 : i32 to vector<1024x128xi32>
    %9 = arith.cmpi slt, %7, %8 : vector<1024x128xi32>
    %cst_5 = arith.constant 0.000000e+00 : f32
    %10 = vector.broadcast %cst_5 : f32 to vector<1024x128xf32>
    %11 = arith.select %9, %2, %10 : vector<1024x128xi1>, vector<1024x128xf32>
    %cst_6 = arith.constant dense<0.000000e+00> : vector<128xf32>
    %12 = vector.multi_reduction <add>, %11, %cst_6 [0] : vector<1024x128xf32> to vector<128xf32>
    %13 = vector.shape_cast %12 : vector<128xf32> to vector<1x128xf32>
    %c0_7 = arith.constant 0 : index
    %c0_8 = arith.constant 0 : index
    %c0_9 = arith.constant 0 : index
    %14 = vector.load %arg4[%c0_7, %c0_8, %c0_9] : memref<1x1x128xf32, #tpu.memory_space<vmem>>, vector<1x1x128xf32>
    %15 = vector.shape_cast %14 : vector<1x1x128xf32> to vector<1x128xf32>
    %16 = vector.shape_cast %13 : vector<1x128xf32> to vector<1x1x128xf32>
    tpu.vector_store %arg4[%c0_7, %c0_8, %c0_9], %16 {strides = array<i32>} : memref<1x1x128xf32, #tpu.memory_space<vmem>>, vector<1x1x128xf32>,
    %17 = arith.mulf %11, %11 : vector<1024x128xf32>
    %cst_10 = arith.constant dense<0.000000e+00> : vector<128xf32>
    %18 = vector.multi_reduction <add>, %17, %cst_10 [0] : vector<1024x128xf32> to vector<128xf32>
    %19 = vector.shape_cast %18 : vector<128xf32> to vector<1x128xf32>
    %c0_11 = arith.constant 0 : index
    %c0_12 = arith.constant 0 : index
    %c0_13 = arith.constant 0 : index
    %20 = vector.load %arg5[%c0_11, %c0_12, %c0_13] : memref<1x1x128xf32, #tpu.memory_space<vmem>>, vector<1x1x128xf32>
    %21 = vector.shape_cast %20 : vector<1x1x128xf32> to vector<1x128xf32>
    %22 = vector.shape_cast %19 : vector<1x128xf32> to vector<1x1x128xf32>
    tpu.vector_store %arg5[%c0_11, %c0_12, %c0_13], %22 {strides = array<i32>} : memref<1x1x128xf32, #tpu.memory_space<vmem>>, vector<1x1x128xf32>,
    return
  }
  func.func @transform_0(%arg0: i32) -> (i32, i32) {
    %c0_i32 = arith.constant 0 : i32
    %c0_i32_0 = arith.constant 0 : i32
    return %arg0, %c0_i32 : i32, i32
  }
  func.func @transform_1(%arg0: i32) -> (i32, i32) {
    %c0_i32 = arith.constant 0 : i32
    %c0_i32_0 = arith.constant 0 : i32
    %c0_i32_1 = arith.constant 0 : i32
    return %c0_i32, %c0_i32_0 : i32, i32
  }
  func.func @transform_2(%arg0: i32) -> (i32, i32) {
    %c0_i32 = arith.constant 0 : i32
    %c0_i32_0 = arith.constant 0 : i32
    return %arg0, %c0_i32 : i32, i32
  }
  func.func @transform_3(%arg0: i32) -> (i32, i32, i32) {
    %c0_i32 = arith.constant 0 : i32
    %c0_i32_0 = arith.constant 0 : i32
    %c0_i32_1 = arith.constant 0 : i32
    return %arg0, %c0_i32, %c0_i32_0 : i32, i32, i32
  }
  func.func @transform_4(%arg0: i32) -> (i32, i32, i32) {
    %c0_i32 = arith.constant 0 : i32
    %c0_i32_0 = arith.constant 0 : i32
    %c0_i32_1 = arith.constant 0 : i32
    return %arg0, %c0_i32, %c0_i32_0 : i32, i32, i32
  }
}

</mosaic_0001>

<bundles_post_ra>
// kernel: tpu_custom_call.1
= control target key start
LH: loop header
LB: loop body
LE: loop exit
PB: predicated region body
PF: predicated region fallthrough
CT: control target
= control target key end

     0   :  { %s3642_s0 = inlined_call_operand.hbm [shape: f32[1536,128], index: 0, kind: input, shape index: {}]   ;;  %s3643_s1 = inlined_call_operand.hbm [shape: f32[128,128], index: 1, kind: input, shape index: {}]   ;;  %s3644_s2 = inlined_call_operand.hbm [shape: f32[1536,128], index: 2, kind: output, shape index: {0}]   ;;  %s3645_s3 = inlined_call_operand.hbm [shape: f32[2,1,128], index: 3, kind: output, shape index: {1}]   ;;  %s3646_s4 = inlined_call_operand.hbm [shape: f32[2,1,128], index: 4, kind: output, shape index: {2}]  }
   0x1   :  { %3655 = sst [smem:[#allocation15_spill]] %s3642_s0 }
   0x2   :  { %10 = vsyncpa [#allocation3], 0 }
   0x3   :  { %12 = vsyncpa [#allocation3 + $0x1], 0 }
   0x4   :  { %13 = vsyncpa [#allocation6], 0 }
   0x5   :  { %14 = vsyncpa [#allocation4], 0 }
   0x6   :  { %16 = vsyncpa [#allocation4 + $0x1], 0 }
   0x7   :  { %17 = vsyncpa [#allocation9], 0 }
   0x8   :  { %19 = vsyncpa [#allocation9 + $0x1], 0  ;;  %s2464_s15 = smov 0   ;;  %s2466_s16 = smov 0  }
   0x9   :  { %s2468_s17 = smov 0   ;;  %s2470_s18 = smov 0  }
   0xa LB: > { %s2485_s19 = sadd.s32 4294967295, %s2428_s18   ;;  %s3647_s20 = sadd.s32 4294967294, %s2428_s18   ;;  %s2428_s18 = sphi %s2470_s18, %s3677_s18   ;;  %s2424_s17 = sphi %s2468_s17, %s3676_s17   ;;  %s2420_s16 = sphi %s2466_s16, %s3675_s16   ;;  %s2416_s15 = sphi %s2464_s15, %s3674_s15  }
   0xb   : > { %s2489_s21 = sadd.s32 1, %s2428_s18   ;;  %s32_s22 = sadd.s32 1, %s2424_s17 }
   0xc   : > { %s29_s23 = ssub.s32 %s2428_s18, %s2489_s21  ;;  %p39_p0 = scmp.ne.s32.totalorder %s2424_s17, %s2420_s16 }
   0xd   : > { %p30_p1 = scmp.eq.s32.totalorder %s29_s23, 0  ;;  %p40_p2 = scmp.eq.s32.totalorder %s2428_s18, 0 }
   0xe   : > { %p45_p3 = scmp.ne.s32.totalorder %s2420_s16, %s2416_s15  ;;  %p3650_p4 = scmp.eq.s32.totalorder %s2485_s19, 0 }
   0xf   : > { %s2501_s24 = scalar_select %p30_p1, %s2424_s17, %s32_s22  }
  0x10   : > { %p2503_p5 = por %p40_p2, %p39_p0  ;;  %p2509_p6 = por %p3650_p4, %p45_p3 }
  0x11   : > { %p90_p7 = scmp.eq.s32.totalorder %s2485_s19, 1  ;;  %p96_p8 = scmp.eq.s32.totalorder %s3647_s20, 1 }
  0x12   : > { %p2046_p9 = scmp.ge.s32.totalorder %s2428_s18, 1  ;;  %p155_p10 = scmp.lt.s32.totalorder %s2428_s18, 3 }
  0x13   : > { %p2518_p11 = por %p90_p7, %p39_p0  ;;  %p2522_p12 = por %p96_p8, %p45_p3 }
  0x14   : > { %p2526_p13 = pnand %p2046_p9, %p155_p10  ;;  %s166_s6 = sshll.u32 %s3643_s1, 4  ;;  %s167_s6 = int_to_ptr.hbm [resolvable:$true] %s166_s6 }
  0x15   : > { %s3659_s28 = scalar_select %p2522_p12, 1, 0 }
  0x16   : > { %p2130_p1 = pneg %p2526_p13  ;;  %s2430_s7 = smov [#allocation5]  }
  0x17   : > { %s168_s8 = sshll.u32 %s2430_s7, 4  ;;  %s2431_s9 = smov 128   ;;  %s169_s8 = int_to_ptr.vmem [resolvable:$true] %s168_s8 }
  0x18   : > { %p2131_p0 = pnand %p2130_p1, %p3650_p4  ;;  %s2432_s10 = smov 8  }
  0x19   : > { %p3649_p2 = scmp.ge.s32.totalorder %s2428_s18, 2 }
  0x1a   : > { %2133 = dma.hbm_to_vmem [thread:$0]  (!%p2131_p0), %s167_s6, 2048, %s169_s8, [#allocation6], %s2431_s9, %s2431_s9, %s2432_s10  }
  0x1b   : > { %178 = sbr.rel (%p3649_p2) target bundleno = 75 (0x4b), region = 20 }
  0x20   : > { %181 = sbr.rel (!%p2503_p5) target bundleno = 75 (0x4b), region = 24  ;;  %s182_s11 = sand.u32 (%p2503_p5), 1, %s2424_s17  }
  0x21   : > { %s2050_s12 = sshll.u32 (%p2503_p5), %s2428_s18, 7  ;;  %s2049_s13 = sshll.u32 (%p2503_p5), %s182_s11, 10 }
  0x22   : > { %s188_s14 = ssub.s32 (%p2503_p5), 192, %s2050_s12  ;;  %s2547_s5 = scalar_lea.sflag (%p2503_p5), [#allocation3], %s182_s11 }
  0x23   : > { %p189_p3 = scmp.lt.s32.totalorder (%p2503_p5), %s188_s14, 128  ;;  %s186_s6 = scalar_lea.vmem (%p2503_p5), [#allocation2], %s2049_s13 }
  0x25   : > { %s3679_s14 = smov (!%p189_p3, %s188_s14), 128 }
  0x26   : > { %s2051_s22 = sshll.u32 %s3679_s14, 3 }
  0x27   : > { %s192_s23 = ssub.s32 1024, %s2051_s22 }
  0x28   : > { %s193_s30 = sshll.u32 %s192_s23, 4 }
  0x29   : > { %194 = vsyncadd %s2547_s5, %s193_s30  ;;  %p2550_p5 = scmp.ne.s32.totalorder %s2051_s22, 0  ;;  %s2070_s7 = sshll.u32 %s2428_s18, 10 }
  0x2a   : > { %s3662_s0 = sld [smem:[#allocation15_spill]]  ;;  %s2558_s12 = sshll.u32 %s186_s6, 4  ;;  %s202_s12 = int_to_ptr.vmem [resolvable:$true] %s2558_s12 }
  0x2b   : > { %s3648_s13 = sshll.u32 %s3679_s14, 7 }
  0x2c   : > { %s2250_s22 = sshrl.u32 %s3648_s13, 4 }
  0x30   : > { %s197_s10 = scalar_lea.hbm %s3662_s0, %s2070_s7  ;;  %s2259_s6 = scalar_lea.hbm %s3662_s0, 1536 }
  0x31   : > { %s199_s11 = sshll.u32 %s197_s10, 4  ;;  %s2561_s11 = int_to_ptr.hbm [resolvable:$true] %s199_s11 }
  0x32   : > { %s2248_s23 = sshra.s32 %s2561_s11, 4  ;;  %s2249_s23 = int_to_ptr.hbm [resolvable:$true] %s2248_s23 }
  0x33   : > { %s2255_s30 = scalar_lea.hbm %s2249_s23, %s2250_s22  ;;  %p2260_p10 = scmp.lt.s32.totalorder %s2249_s23, %s3662_s0 }
  0x34   : > { %p2256_p7 = scmp.ne.s32.totalorder %s2249_s23, %s2255_s30  ;;  %p2261_p1 = scmp.lt.s32.totalorder %s2259_s6, %s2255_s30 }
  0x36   : > { %p2257_p8 = pnand %p2256_p7, %p2550_p5  ;;  %p2262_p0 = por %p2261_p1, %p2260_p10 }
  0x38   : > { %p2258_p9 = pneg %p2257_p8 }
  0x3a   : > { %p2263_p3 = pnand %p2262_p0, %p2258_p9 }
  0x3c   : > { %2266 = shalt.err (!%p2263_p3)
}
  0x3d   : > { %s2267_s20 = sshra.s32 %s202_s12, 4  ;;  %s2433_s8 = smov [#allocation2]   ;;  %s2268_s20 = int_to_ptr.vmem [resolvable:$true] %s2267_s20 }
  0x3e   : > { %s2274_s13 = scalar_lea.vmem %s2268_s20, %s2250_s22  ;;  %s2278_s7 = scalar_lea.vmem %s2433_s8, 2048 }
  0x3f   : > { %p2275_p7 = scmp.ne.s32.totalorder %s2268_s20, %s2274_s13  ;;  %p2280_p4 = scmp.lt.s32.totalorder %s2278_s7, %s2274_s13 }
  0x41   : > { %p2276_p8 = pnand %p2275_p7, %p2550_p5 }
  0x43   : > { %p2277_p2 = pneg %p2276_p8 }
  0x45   : > { %p2282_p12 = pnand %p2280_p4, %p2277_p2 }
  0x47   : > { %2285 = shalt.err (!%p2282_p12)
}
  0x48   : > { %s2434_s23 = smov 128   ;;  %s2435_s30 = smov 8  }
  0x49   : > { %s3663_s6 = sshll.u32 %s3679_s14, 7 }
  0x4a   : > { %207 = dma.hbm_to_vmem [thread:$0]  (%p2550_p5), %s2561_s11, %s3663_s6, %s202_s12, %s2547_s5, %s2434_s23, %s2434_s23, %s2435_s30  }
  0x4b PF: > { %213 = sbr.rel (%p2526_p13) target bundleno = 759 (0x2f7), region = 28  ;;  %s2590_s20 = sand.u32 (!%p2526_p13), 1, %s2420_s16  }
  0x4c   : > { %s2057_s13 = sshll.u32 (!%p2526_p13), %s2590_s20, 10  ;;  %s216_s22 = scalar_lea.sflag (!%p2526_p13), [#allocation3], %s2590_s20 }
  0x4d   : > { %s2596_s9 = scalar_lea.vmem (!%p2526_p13), [#allocation2], %s2057_s13 }
  0x50   : > { %2399 = dma.done.wait (%p2509_p6), %s216_s22, 16384  }
  0x51   : > { %2401 = vsyncadd (%p2509_p6), %s216_s22, 4294950912  ;;  %p3664_p4 = scmp.eq.s32.totalorder %s2485_s19, 0 }
  0x53   : > { %2403 = dma.done.wait (%p3664_p4), [#allocation6], 2048   ;;  %p3665_p12 = pmov %p3664_p4 }
  0x54   : > { %v411_v0 = vld [vmem:[#allocation5 + $0x78] sm:$0xff]  ;;  %v410_v1 = vld [vmem:[#allocation5 + $0x70] sm:$0xff]  ;;  %v409_v2 = vld [vmem:[#allocation5 + $0x68] sm:$0xff]  ;;  %s2644_s26 = scalar_lea.vmem [#allocation7], %s2057_s13  ;;  %s2060_s29 = sshll.u32 %s2485_s19, 10 }
  0x55   : > { %2405 = vsyncadd (%p3665_p12), [#allocation6], 4294965248  ;;  %412 = vmatpush.msra.mxu0 %v411_v0  ;;  %2072 = vmatpush.msra.mxu1 %v411_v0  ;;  %v408_v3 = vld [vmem:[#allocation5 + $0x60] sm:$0xff]  ;;  %v407_v4 = vld [vmem:[#allocation5 + $0x58] sm:$0xff]  ;;  %s1857_s14 = sand.u32 1, %s2485_s19   ;;  %s3652_s5 = scalar_lea.vmem [#allocation8], %s2590_s20 }
  0x56   : > { %2073 = vmatpush.msra.mxu2 %v411_v0  ;;  %2074 = vmatpush.msra.mxu3 %v411_v0  ;;  %v406_v5 = vld [vmem:[#allocation5 + $0x50] sm:$0xff]  ;;  %v405_v6 = vld [vmem:[#allocation5 + $0x48] sm:$0xff]  ;;  %v404_v7 = vld [vmem:[#allocation5 + $0x40] sm:$0xff]  ;;  %s3651_s25 = scalar_lea.vmem [#allocation10], %s2590_s20  ;;  %s3654_s12 = scalar_lea.sflag [#allocation4], %s2590_s20 }
  0x57   : > { %413 = vmatpush.msra.mxu0 %v410_v1  ;;  %2075 = vmatpush.msra.mxu1 %v410_v1  ;;  %v403_v8 = vld [vmem:[#allocation5 + $0x38] sm:$0xff]  ;;  %v402_v9 = vld [vmem:[#allocation5 + $0x30] sm:$0xff]  ;;  %v401_v10 = vld [vmem:[#allocation5 + $0x28] sm:$0xff]  ;;  %s3541_s11 = scalar_lea.sflag [#allocation9], %s1857_s14  ;;  %s2062_s10 = sshll.u32 (%p2518_p11), %s2485_s19, 7 }
  0x58   : > { %2076 = vmatpush.msra.mxu2 %v410_v1  ;;  %2077 = vmatpush.msra.mxu3 %v410_v1  ;;  %v400_v11 = vld [vmem:[#allocation5 + $0x20] sm:$0xff]  ;;  %v399_v12 = vld [vmem:[#allocation5 + $0x18] sm:$0xff]  ;;  %v398_v13 = vld [vmem:[#allocation5 + $0x10] sm:$0xff]  ;;  %s1869_s8 = ssub.s32 (%p2518_p11), 192, %s2062_s10 }
  0x59   : > { %414 = vmatpush.msra.mxu0 %v409_v2  ;;  %2078 = vmatpush.msra.mxu1 %v409_v2  ;;  %v397_v14 = vld [vmem:[#allocation5 + $0x8] sm:$0xff]  ;;  %v396_v15 = vld [vmem:[#allocation5] sm:$0xff]  ;;  %v270_v18 = vld [vmem:[%s2596_s9 + $0x10] sm:$0xff]  ;;  %p1870_p6 = scmp.lt.s32.totalorder (%p2518_p11), %s1869_s8, 128 }
  0x5a   : > { %2079 = vmatpush.msra.mxu2 %v409_v2  ;;  %2080 = vmatpush.msra.mxu3 %v409_v2  ;;  %v268_v16 = vld [vmem:[%s2596_s9] sm:$0xff]  ;;  %v269_v17 = vld [vmem:[%s2596_s9 + $0x8] sm:$0xff]  ;;  %v271_v19 = vld [vmem:[%s2596_s9 + $0x18] sm:$0xff] }
  0x5b   : > { %415 = vmatpush.msra.mxu0 %v408_v3  ;;  %2081 = vmatpush.msra.mxu1 %v408_v3  ;;  %v272_v20 = vld [vmem:[%s2596_s9 + $0x20] sm:$0xff]  ;;  %v273_v22 = vld [vmem:[%s2596_s9 + $0x28] sm:$0xff]  ;;  %v274_v24 = vld [vmem:[%s2596_s9 + $0x30] sm:$0xff] }
  0x5c   : > { %2082 = vmatpush.msra.mxu2 %v408_v3  ;;  %2083 = vmatpush.msra.mxu3 %v408_v3  ;;  %v300_v21 = vld [vmem:[%s2596_s9 + $0x100] sm:$0xff]  ;;  %v301_v23 = vld [vmem:[%s2596_s9 + $0x108] sm:$0xff]  ;;  %v302_v25 = vld [vmem:[%s2596_s9 + $0x110] sm:$0xff] }
  0x5d   : > { %416 = vmatpush.msra.mxu0 %v407_v4  ;;  %2084 = vmatpush.msra.mxu1 %v407_v4  ;;  %v275_v26 = vld [vmem:[%s2596_s9 + $0x38] sm:$0xff]  ;;  %v276_v28 = vld [vmem:[%s2596_s9 + $0x40] sm:$0xff]  ;;  %v277_v30 = vld [vmem:[%s2596_s9 + $0x48] sm:$0xff] }
  0x5e   : > { %2085 = vmatpush.msra.mxu2 %v407_v4  ;;  %2086 = vmatpush.msra.mxu3 %v407_v4  ;;  %v303_v27 = vld [vmem:[%s2596_s9 + $0x118] sm:$0xff]  ;;  %v304_v29 = vld [vmem:[%s2596_s9 + $0x120] sm:$0xff]  ;;  %v305_v31 = vld [vmem:[%s2596_s9 + $0x128] sm:$0xff] }
  0x5f   : > { %417 = vmatpush.msra.mxu0 %v406_v5  ;;  %2087 = vmatpush.msra.mxu1 %v406_v5  ;;  %v278_v32 = vld [vmem:[%s2596_s9 + $0x50] sm:$0xff]  ;;  %v279_v34 = vld [vmem:[%s2596_s9 + $0x58] sm:$0xff]  ;;  %v332_v36 = vld [vmem:[%s2596_s9 + $0x200] sm:$0xff] }
  0x60   : > { %2088 = vmatpush.msra.mxu2 %v406_v5  ;;  %2089 = vmatpush.msra.mxu3 %v406_v5  ;;  %v306_v33 = vld [vmem:[%s2596_s9 + $0x130] sm:$0xff]  ;;  %v307_v35 = vld [vmem:[%s2596_s9 + $0x138] sm:$0xff]  ;;  %v280_v37 = vld [vmem:[%s2596_s9 + $0x60] sm:$0xff] }
  0x61   : > { %418 = vmatpush.msra.mxu0 %v405_v6  ;;  %2090 = vmatpush.msra.mxu1 %v405_v6  ;;  %v308_v38 = vld [vmem:[%s2596_s9 + $0x140] sm:$0xff]  ;;  %v333_v39 = vld [vmem:[%s2596_s9 + $0x208] sm:$0xff]  ;;  %v334_v42 = vld [vmem:[%s2596_s9 + $0x210] sm:$0xff] }
  0x62   : > { %2091 = vmatpush.msra.mxu2 %v405_v6  ;;  %2092 = vmatpush.msra.mxu3 %v405_v6  ;;  %v281_v40 = vld [vmem:[%s2596_s9 + $0x68] sm:$0xff]  ;;  %v282_v43 = vld [vmem:[%s2596_s9 + $0x70] sm:$0xff]  ;;  %v335_v45 = vld [vmem:[%s2596_s9 + $0x218] sm:$0xff]  ;;  %v942_v6 = vlaneseq }
  0x63   : > { %419 = vmatpush.msra.mxu0 %v404_v7  ;;  %2093 = vmatpush.msra.mxu1 %v404_v7  ;;  %v309_v41 = vld [vmem:[%s2596_s9 + $0x148] sm:$0xff]  ;;  %v310_v44 = vld [vmem:[%s2596_s9 + $0x150] sm:$0xff]  ;;  %v283_v46 = vld [vmem:[%s2596_s9 + $0x78] sm:$0xff] }
  0x64   : > { %2094 = vmatpush.msra.mxu2 %v404_v7  ;;  %2095 = vmatpush.msra.mxu3 %v404_v7  ;;  %v311_v47 = vld [vmem:[%s2596_s9 + $0x158] sm:$0xff]  ;;  %v336_v48 = vld [vmem:[%s2596_s9 + $0x220] sm:$0xff]  ;;  %v337_v52 = vld [vmem:[%s2596_s9 + $0x228] sm:$0xff] }
  0x65   : > { %420 = vmatpush.msra.mxu0 %v403_v8  ;;  %2096 = vmatpush.msra.mxu1 %v403_v8  ;;  %v284_v50 = vld [vmem:[%s2596_s9 + $0x80] sm:$0xff]  ;;  %v285_v54 = vld [vmem:[%s2596_s9 + $0x88] sm:$0xff]  ;;  %v338_v56 = vld [vmem:[%s2596_s9 + $0x230] sm:$0xff] }
  0x66   : > { %2097 = vmatpush.msra.mxu2 %v403_v8  ;;  %2098 = vmatpush.msra.mxu3 %v403_v8  ;;  %v312_v51 = vld [vmem:[%s2596_s9 + $0x160] sm:$0xff]  ;;  %v313_v55 = vld [vmem:[%s2596_s9 + $0x168] sm:$0xff]  ;;  %v286_v58 = vld [vmem:[%s2596_s9 + $0x90] sm:$0xff] }
  0x67   : > { %421 = vmatpush.msra.mxu0 %v402_v9  ;;  %2099 = vmatpush.msra.mxu1 %v402_v9  ;;  %v314_v59 = vld [vmem:[%s2596_s9 + $0x170] sm:$0xff]  ;;  %v339_v60 = vld [vmem:[%s2596_s9 + $0x238] sm:$0xff]  ;;  %v340_v0 = vld [vmem:[%s2596_s9 + $0x240] sm:$0xff] }
  0x68   : > { %2100 = vmatpush.msra.mxu2 %v402_v9  ;;  %2101 = vmatpush.msra.mxu3 %v402_v9  ;;  %v287_v62 = vld [vmem:[%s2596_s9 + $0x98] sm:$0xff]  ;;  %v364_v1 = vld [vmem:[%s2596_s9 + $0x300] sm:$0xff]  ;;  %v341_v7 = vld [vmem:[%s2596_s9 + $0x248] sm:$0xff]  ;;  %v2681_v9 = vshrl.u32 %v942_v6, 7 }
  0x69   : > { %422 = vmatpush.msra.mxu0 %v401_v10  ;;  %2102 = vmatpush.msra.mxu1 %v401_v10  ;;  %v315_v63 = vld [vmem:[%s2596_s9 + $0x178] sm:$0xff]  ;;  %v288_v3 = vld [vmem:[%s2596_s9 + $0xa0] sm:$0xff]  ;;  %v365_v8 = vld [vmem:[%s2596_s9 + $0x308] sm:$0xff] }
  0x6a   : > { %2103 = vmatpush.msra.mxu2 %v401_v10  ;;  %2104 = vmatpush.msra.mxu3 %v401_v10  ;;  %v316_v5 = vld [vmem:[%s2596_s9 + $0x180] sm:$0xff] }
  0x6b   : > { %423 = vmatpush.msra.mxu0 %v400_v11  ;;  %2105 = vmatpush.msra.mxu1 %v400_v11 }
  0x6c   : > { %2106 = vmatpush.msra.mxu2 %v400_v11  ;;  %2107 = vmatpush.msra.mxu3 %v400_v11  ;;  %v289_v11 = vld [vmem:[%s2596_s9 + $0xa8] sm:$0xff] }
  0x6d   : > { %424 = vmatpush.msra.mxu0 %v399_v12  ;;  %2108 = vmatpush.msra.mxu1 %v399_v12 }
  0x6e   : > { %2109 = vmatpush.msra.mxu2 %v399_v12  ;;  %2110 = vmatpush.msra.mxu3 %v399_v12 }
  0x6f   : > { %425 = vmatpush.msra.mxu0 %v398_v13  ;;  %2111 = vmatpush.msra.mxu1 %v398_v13 }
  0x70   : > { %2112 = vmatpush.msra.mxu2 %v398_v13  ;;  %2113 = vmatpush.msra.mxu3 %v398_v13  ;;  %v944_v13 = vadd.s32 8, %v2681_v9 }
  0x71   : > { %426 = vmatpush.msra.mxu0 %v397_v14  ;;  %2114 = vmatpush.msra.mxu1 %v397_v14 }
  0x72   : > { %2115 = vmatpush.msra.mxu2 %v397_v14  ;;  %2116 = vmatpush.msra.mxu3 %v397_v14  ;;  %v317_v14 = vld [vmem:[%s2596_s9 + $0x188] sm:$0xff] }
  0x73   : > { %427 = vmatpush.msra.mxu0 %v396_v15  ;;  %2117 = vmatpush.msra.mxu1 %v396_v15 }
  0x74   : > { %428 = vmatmul.f32.vlgmr.msra.gmra.mxu0 %v268_v16  ;;  %2118 = vmatpush.msra.mxu2 %v396_v15  ;;  %v945_v16 = vadd.s32 16, %v2681_v9 }
  0x75   : > { %2119 = vmatpush.msra.mxu3 %v396_v15  ;;  %524 = vmatmul.f32.vlgmr.msra.gmra.mxu1 %v300_v21  ;;  %v2694_v15 = vstv %s2060_s29 }
  0x76   : > { %620 = vmatmul.f32.vlgmr.msra.gmra.mxu2 %v332_v36  ;;  %716 = vmatmul.f32.vlgmr.msra.gmra.mxu3 %v364_v1  ;;  %v1072_v21 = vadd.s32 %v2694_v15, %v2681_v9 }
  0x78   : > { %vm1200_vm1 = vcmp.lt.s32.totalorder %v1072_v21, 1536 }
  0x7c   : > { %431 = vmatmul.f32.gmra.mxu0 %v269_v17  ;;  %v342_v17 = vld [vmem:[%s2596_s9 + $0x250] sm:$0xff] }
  0x7d   : > { %527 = vmatmul.f32.gmra.mxu1 %v301_v23  ;;  %v947_v23 = vadd.s32 32, %v2681_v9 }
  0x7e   : > { %623 = vmatmul.f32.gmra.mxu2 %v333_v39  ;;  %719 = vmatmul.f32.gmra.mxu3 %v365_v8 }
  0x84   : > { %434 = vmatmul.f32.gmra.mxu0 %v270_v18  ;;  %v366_v18 = vld [vmem:[%s2596_s9 + $0x310] sm:$0xff] }
  0x85   : > { %530 = vmatmul.f32.gmra.mxu1 %v302_v25  ;;  %v290_v25 = vld [vmem:[%s2596_s9 + $0xb0] sm:$0xff] }
  0x86   : > { %626 = vmatmul.f32.gmra.mxu2 %v334_v42  ;;  %722 = vmatmul.f32.gmra.mxu3 %v366_v18  ;;  %v291_v42 = vld [vmem:[%s2596_s9 + $0xb8] sm:$0xff]  ;;  %v345_v18 = vld [vmem:[%s2596_s9 + $0x268] sm:$0xff] }
  0x8c   : > { %437 = vmatmul.f32.gmra.mxu0 %v271_v19  ;;  %v1073_v19 = vadd.s32 %v2694_v15, %v944_v13 }
  0x8d   : > { %533 = vmatmul.f32.gmra.mxu1 %v303_v27 }
  0x8e   : > { %629 = vmatmul.f32.gmra.mxu2 %v335_v45  ;;  %vm1201_vm0 = vcmp.lt.s32.totalorder %v1073_v19, 1536  ;;  %v369_v19 = vld [vmem:[%s2596_s9 + $0x328] sm:$0xff] }
  0x94   : > { %440 = vmatmul.f32.gmra.mxu0 %v272_v20  ;;  %v946_v20 = vadd.s32 24, %v2681_v9 }
  0x95   : > { %536 = vmatmul.f32.gmra.mxu1 %v304_v29  ;;  %v318_v29 = vld [vmem:[%s2596_s9 + $0x190] sm:$0xff] }
  0x96   : > { %632 = vmatmul.f32.gmra.mxu2 %v336_v48  ;;  %v1075_v27 = vadd.s32 %v2694_v15, %v946_v20 }
  0x98   : > { %vm1203_vm3 = vcmp.lt.s32.totalorder %v1075_v27, 1536  ;;  %v293_v27 = vld [vmem:[%s2596_s9 + $0xc8] sm:$0xff] }
  0x9c   : > { %443 = vmatmul.f32.gmra.mxu0 %v273_v22  ;;  %v1074_v22 = vadd.s32 %v2694_v15, %v945_v16 }
  0x9d   : > { %539 = vmatmul.f32.gmra.mxu1 %v305_v31  ;;  %v1076_v31 = vadd.s32 %v2694_v15, %v947_v23  ;;  %v953_v23 = vadd.s32 80, %v2681_v9 }
  0x9e   : > { %635 = vmatmul.f32.gmra.mxu2 %v337_v52  ;;  %vm1202_vm2 = vcmp.lt.s32.totalorder %v1074_v22, 1536 }
  0x9f   : > { %vm1204_vm4 = vcmp.lt.s32.totalorder %v1076_v31, 1536 }
  0xa4   : > { %446 = vmatmul.f32.gmra.mxu0 %v274_v24 }
  0xa5   : > { %542 = vmatmul.f32.gmra.mxu1 %v306_v33  ;;  %v343_v33 = vld [vmem:[%s2596_s9 + $0x258] sm:$0xff] }
  0xa6   : > { %638 = vmatmul.f32.gmra.mxu2 %v338_v56  ;;  %v344_v56 = vld [vmem:[%s2596_s9 + $0x260] sm:$0xff] }
  0xac   : > { %449 = vmatmul.f32.gmra.mxu0 %v275_v26 }
  0xad   : > { %545 = vmatmul.f32.gmra.mxu1 %v307_v35 }
  0xae   : > { %641 = vmatmul.f32.gmra.mxu2 %v339_v60 }
  0xb4   : > { %452 = vmatmul.f32.gmra.mxu0 %v276_v28  ;;  %v948_v28 = vadd.s32 40, %v2681_v9 }
  0xb5   : > { %548 = vmatmul.f32.gmra.mxu1 %v308_v38 }
  0xb6   : > { %644 = vmatmul.f32.gmra.mxu2 %v340_v0  ;;  %v1077_v36 = vadd.s32 %v2694_v15, %v948_v28 }
  0xb8   : > { %vm1205_vm5 = vcmp.lt.s32.totalorder %v1077_v36, 1536  ;;  %v346_v36 = vld [vmem:[%s2596_s9 + $0x270] sm:$0xff] }
  0xbc   : > { %455 = vmatmul.f32.gmra.mxu0 %v277_v30 }
  0xbd   : > { %551 = vmatmul.f32.gmra.mxu1 %v309_v41 }
  0xbe   : > { %647 = vmatmul.f32.gmra.mxu2 %v341_v7 }
  0xc4   : > { %458 = vmatmul.f32.gmra.mxu0 %v278_v32  ;;  %v949_v32 = vadd.s32 48, %v2681_v9 }
  0xc5   : > { %554 = vmatmul.f32.gmra.mxu1 %v310_v44 }
  0xc6   : > { %650 = vmatmul.f32.gmra.mxu2 %v342_v17 }
  0xcc   : > { %461 = vmatmul.f32.gmra.mxu0 %v279_v34  ;;  %v367_v34 = vld [vmem:[%s2596_s9 + $0x318] sm:$0xff] }
  0xcd   : > { %557 = vmatmul.f32.gmra.mxu1 %v311_v47  ;;  %725 = vmatmul.f32.gmra.mxu3 %v367_v34  ;;  %v321_v34 = vld [vmem:[%s2596_s9 + $0x1a8] sm:$0xff] }
  0xce   : > { %653 = vmatmul.f32.gmra.mxu2 %v343_v33  ;;  %v1082_v33 = vadd.s32 %v2694_v15, %v953_v23  ;;  %v325_v23 = vld [vmem:[%s2596_s9 + $0x1c8] sm:$0xff] }
  0xd0   : > { %vm1210_vm10 = vcmp.lt.s32.totalorder %v1082_v33, 1536 }
  0xd4   : > { %464 = vmatmul.f32.gmra.mxu0 %v280_v37  ;;  %v950_v37 = vadd.s32 56, %v2681_v9 }
  0xd5   : > { %560 = vmatmul.f32.gmra.mxu1 %v312_v51 }
  0xd6   : > { %656 = vmatmul.f32.gmra.mxu2 %v344_v56 }
  0xdc   : > { %467 = vmatmul.f32.gmra.mxu0 %v281_v40  ;;  %v1078_v40 = vadd.s32 %v2694_v15, %v949_v32 }
  0xdd   : > { %563 = vmatmul.f32.gmra.mxu1 %v313_v55 }
  0xde   : > { %vm1206_vm6 = vcmp.lt.s32.totalorder %v1078_v40, 1536  ;;  %659 = vmatmul.f32.gmra.mxu2 %v345_v18  ;;  %v294_v40 = vld [vmem:[%s2596_s9 + $0xd0] sm:$0xff] }
  0xe4   : > { %470 = vmatmul.f32.gmra.mxu0 %v282_v43  ;;  %v951_v43 = vadd.s32 64, %v2681_v9 }
  0xe5   : > { %566 = vmatmul.f32.gmra.mxu1 %v314_v59  ;;  %v952_v59 = vadd.s32 72, %v2681_v9 }
  0xe6   : > { %v1080_v55 = vadd.s32 %v2694_v15, %v951_v43  ;;  %662 = vmatmul.f32.gmra.mxu2 %v346_v36 }
  0xe7   : > { %v1081_v7 = vadd.s32 %v2694_v15, %v952_v59 }
  0xe8   : > { %vm1208_vm8 = vcmp.lt.s32.totalorder %v1080_v55, 1536 }
  0xe9   : > { %vm1209_vm9 = vcmp.lt.s32.totalorder %v1081_v7, 1536 }
  0xec   : > { %473 = vmatmul.f32.gmra.mxu0 %v283_v46 }
  0xed   : > { %569 = vmatmul.f32.gmra.mxu1 %v315_v63 }
  0xf1   : > { %v2639_v49 = vpop.f32.mrf.mxu0 }
  0xf2   : > { %813 = vst [vmem:[%s2644_s26] sm:$0xff] %v2639_v49  ;;  %v525_v4 = vpop.f32.mrf.mxu1  ;;  %v1328_v35 = vsel %vm1200_vm1, %v2639_v49, 0.0  ;;  %v1079_v49 = vadd.s32 %v2694_v15, %v950_v37  ;;  %v370_v37 = vld [vmem:[%s2596_s9 + $0x330] sm:$0xff] }
  0xf3   : > { %845 = vst [vmem:[%s2644_s26 + $0x100] sm:$0xff] %v525_v4  ;;  %v1590_v45 = vmul.f32 %v1328_v35, %v1328_v35  ;;  %v292_v4 = vld [vmem:[%s2596_s9 + $0xc0] sm:$0xff] }
  0xf4   : > { %476 = vmatmul.f32.gmra.mxu0 %v284_v50  ;;  %v319_v50 = vld [vmem:[%s2596_s9 + $0x198] sm:$0xff]  ;;  %vm1207_vm7 = vcmp.lt.s32.totalorder %v1079_v49, 1536 }
  0xf5   : > { %572 = vmatmul.f32.gmra.mxu1 %v316_v5  ;;  %v371_v49 = vld [vmem:[%s2596_s9 + $0x338] sm:$0xff] }
  0xf9   : > { %v2650_v53 = vpop.f32.mrf.mxu0 }
  0xfa   : > { %814 = vst [vmem:[%s2644_s26 + $0x8] sm:$0xff] %v2650_v53  ;;  %v528_v12 = vpop.f32.mrf.mxu1  ;;  %v1329_v30 = vsel %vm1201_vm0, %v2650_v53, 0.0 }
  0xfb   : > { %846 = vst [vmem:[%s2644_s26 + $0x108] sm:$0xff] %v528_v12  ;;  %v1591_v38 = vmul.f32 %v1329_v30, %v1329_v30  ;;  %v1456_v47 = vadd.f32 %v1329_v30, %v1328_v35  ;;  %v320_v12 = vld [vmem:[%s2596_s9 + $0x1a0] sm:$0xff] }
  0xfc   : > { %479 = vmatmul.f32.gmra.mxu0 %v285_v54 }
  0xfd   : > { %575 = vmatmul.f32.gmra.mxu1 %v317_v14  ;;  %v1718_v51 = vadd.f32 %v1591_v38, %v1590_v45  ;;  %v954_v38 = vadd.s32 88, %v2681_v9 }
  0xff   : > { %v1083_v45 = vadd.s32 %v2694_v15, %v954_v38 }
 0x101   : > { %v2657_v57 = vpop.f32.mrf.mxu0  ;;  %vm1211_vm11 = vcmp.lt.s32.totalorder %v1083_v45, 1536 }
 0x102   : > { %815 = vst [vmem:[%s2644_s26 + $0x10] sm:$0xff] %v2657_v57  ;;  %v531_v26 = vpop.f32.mrf.mxu1  ;;  %v1330_v39 = vsel %vm1202_vm2, %v2657_v57, 0.0  ;;  %v368_v57 = vld [vmem:[%s2596_s9 + $0x320] sm:$0xff] }
 0x103   : > { %847 = vst [vmem:[%s2644_s26 + $0x110] sm:$0xff] %v531_v26  ;;  %v1592_v48 = vmul.f32 %v1330_v39, %v1330_v39  ;;  %v1457_v53 = vadd.f32 %v1456_v47, %v1330_v39  ;;  %728 = vmatmul.f32.gmra.mxu3 %v368_v57 }
 0x104   : > { %482 = vmatmul.f32.gmra.mxu0 %v286_v58 }
 0x105   : > { %578 = vmatmul.f32.gmra.mxu1 %v318_v29  ;;  %v1719_v60 = vadd.f32 %v1718_v51, %v1592_v48  ;;  %v347_v48 = vld [vmem:[%s2596_s9 + $0x278] sm:$0xff] }
 0x106   : > { %665 = vmatmul.f32.gmra.mxu2 %v347_v48 }
 0x109   : > { %v2664_v61 = vpop.f32.mrf.mxu0 }
 0x10a   : > { %816 = vst [vmem:[%s2644_s26 + $0x18] sm:$0xff] %v2664_v61  ;;  %v534_v44 = vpop.f32.mrf.mxu1  ;;  %v1331_v46 = vsel %vm1203_vm3, %v2664_v61, 0.0 }
 0x10b   : > { %848 = vst [vmem:[%s2644_s26 + $0x118] sm:$0xff] %v534_v44  ;;  %v1593_v54 = vmul.f32 %v1331_v46, %v1331_v46  ;;  %v1458_v61 = vadd.f32 %v1457_v53, %v1331_v46  ;;  %731 = vmatmul.f32.gmra.mxu3 %v369_v19  ;;  %v322_v46 = vld [vmem:[%s2596_s9 + $0x1b0] sm:$0xff] }
 0x10c   : > { %485 = vmatmul.f32.gmra.mxu0 %v287_v62 }
 0x10d   : > { %581 = vmatmul.f32.gmra.mxu1 %v319_v50  ;;  %v1720_v0 = vadd.f32 %v1719_v60, %v1593_v54  ;;  %v955_v50 = vadd.s32 96, %v2681_v9  ;;  %v348_v60 = vld [vmem:[%s2596_s9 + $0x280] sm:$0xff] }
 0x10e   : > { %668 = vmatmul.f32.gmra.mxu2 %v348_v60 }
 0x10f   : > { %v1084_v57 = vadd.s32 %v2694_v15, %v955_v50 }
 0x111   : > { %v2672_v2 = vpop.f32.mrf.mxu0  ;;  %vm1212_vm12 = vcmp.lt.s32.totalorder %v1084_v57, 1536 }
 0x112   : > { %817 = vst [vmem:[%s2644_s26 + $0x20] sm:$0xff] %v2672_v2  ;;  %v1332_v52 = vsel %vm1204_vm4, %v2672_v2, 0.0  ;;  %v2736_v5 = vpop.f32.mrf.mxu1 }
 0x113   : > { %v1594_v62 = vmul.f32 %v1332_v52, %v1332_v52  ;;  %v1459_v1 = vadd.f32 %v1458_v61, %v1332_v52  ;;  %849 = vst [vmem:[%s2644_s26 + $0x120] sm:$0xff] %v2736_v5  ;;  %734 = vmatmul.f32.gmra.mxu3 %v370_v37  ;;  %v295_v52 = vld [vmem:[%s2596_s9 + $0xd8] sm:$0xff]  ;;  %v372_v61 = vld [vmem:[%s2596_s9 + $0x340] sm:$0xff]  ;;  %v326_v37 = vld [vmem:[%s2596_s9 + $0x1d0] sm:$0xff] }
 0x114   : > { %488 = vmatmul.f32.gmra.mxu0 %v288_v3 }
 0x115   : > { %v1721_v8 = vadd.f32 %v1720_v0, %v1594_v62  ;;  %584 = vmatmul.f32.gmra.mxu1 %v320_v12  ;;  %v956_v62 = vadd.s32 104, %v2681_v9  ;;  %v296_v0 = vld [vmem:[%s2596_s9 + $0xe0] sm:$0xff]  ;;  %v373_v12 = vld [vmem:[%s2596_s9 + $0x348] sm:$0xff] }
 0x117   : > { %v1085_v7 = vadd.s32 %v2694_v15, %v956_v62 }
 0x119   : > { %v2683_v10 = vpop.f32.mrf.mxu0  ;;  %vm1213_vm13 = vcmp.lt.s32.totalorder %v1085_v7, 1536 }
 0x11a   : > { %818 = vst [vmem:[%s2644_s26 + $0x28] sm:$0xff] %v2683_v10  ;;  %v1333_v58 = vsel %vm1205_vm5, %v2683_v10, 0.0  ;;  %v2747_v28 = vpop.f32.mrf.mxu1 }
 0x11b   : > { %v1595_v2 = vmul.f32 %v1333_v58, %v1333_v58  ;;  %v1460_v10 = vadd.f32 %v1459_v1, %v1333_v58  ;;  %850 = vst [vmem:[%s2644_s26 + $0x128] sm:$0xff] %v2747_v28  ;;  %737 = vmatmul.f32.gmra.mxu3 %v371_v49  ;;  %v323_v58 = vld [vmem:[%s2596_s9 + $0x1b8] sm:$0xff] }
 0x11c   : > { %491 = vmatmul.f32.gmra.mxu0 %v289_v11 }
 0x11d   : > { %v1722_v14 = vadd.f32 %v1721_v8, %v1595_v2  ;;  %587 = vmatmul.f32.gmra.mxu1 %v321_v34  ;;  %v324_v8 = vld [vmem:[%s2596_s9 + $0x1c0] sm:$0xff] }
 0x121   : > { %v447_v24 = vpop.f32.mrf.mxu0 }
 0x122   : > { %819 = vst [vmem:[%s2644_s26 + $0x30] sm:$0xff] %v447_v24  ;;  %v1334_v63 = vsel %vm1206_vm6, %v447_v24, 0.0 }
 0x123   : > { %v1596_v11 = vmul.f32 %v1334_v63, %v1334_v63  ;;  %v1461_v16 = vadd.f32 %v1460_v10, %v1334_v63  ;;  %740 = vmatmul.f32.gmra.mxu3 %v372_v61 }
 0x124   : > { %494 = vmatmul.f32.gmra.mxu0 %v290_v25 }
 0x125   : > { %v1723_v20 = vadd.f32 %v1722_v14, %v1596_v11  ;;  %590 = vmatmul.f32.gmra.mxu1 %v322_v46  ;;  %v349_v11 = vld [vmem:[%s2596_s9 + $0x288] sm:$0xff] }
 0x126   : > { %671 = vmatmul.f32.gmra.mxu2 %v349_v11 }
 0x129   : > { %v450_v41 = vpop.f32.mrf.mxu0 }
 0x12a   : > { %820 = vst [vmem:[%s2644_s26 + $0x38] sm:$0xff] %v450_v41  ;;  %v1335_v6 = vsel %vm1207_vm7, %v450_v41, 0.0  ;;  %v2758_v41 = vpop.f32.mrf.mxu1 }
 0x12b   : > { %v1597_v17 = vmul.f32 %v1335_v6, %v1335_v6  ;;  %v1462_v21 = vadd.f32 %v1461_v16, %v1335_v6  ;;  %851 = vst [vmem:[%s2644_s26 + $0x130] sm:$0xff] %v2758_v41  ;;  %743 = vmatmul.f32.gmra.mxu3 %v373_v12  ;;  %v297_v16 = vld [vmem:[%s2596_s9 + $0xe8] sm:$0xff] }
 0x12c   : > { %497 = vmatmul.f32.gmra.mxu0 %v291_v42 }
 0x12d   : > { %v1724_v24 = vadd.f32 %v1723_v20, %v1597_v17  ;;  %593 = vmatmul.f32.gmra.mxu1 %v323_v58 }
 0x131   : > { %v453_v3 = vpop.f32.mrf.mxu0 }
 0x132   : > { %821 = vst [vmem:[%s2644_s26 + $0x40] sm:$0xff] %v453_v3  ;;  %v1336_v13 = vsel %vm1208_vm8, %v453_v3, 0.0  ;;  %v2769_v53 = vpop.f32.mrf.mxu1  ;;  %v621_v3 = vpop.f32.mrf.mxu2 }
 0x133   : > { %v1598_v22 = vmul.f32 %v1336_v13, %v1336_v13  ;;  %v1463_v25 = vadd.f32 %v1462_v21, %v1336_v13  ;;  %852 = vst [vmem:[%s2644_s26 + $0x138] sm:$0xff] %v2769_v53  ;;  %v957_v13 = vadd.s32 112, %v2681_v9 }
 0x134   : > { %500 = vmatmul.f32.gmra.mxu0 %v292_v4  ;;  %877 = vst [vmem:[%s2644_s26 + $0x200] sm:$0xff] %v621_v3  ;;  %v353_v3 = vld [vmem:[%s2596_s9 + $0x2a8] sm:$0xff] }
 0x135   : > { %v1725_v30 = vadd.f32 %v1724_v24, %v1598_v22  ;;  %596 = vmatmul.f32.gmra.mxu1 %v324_v8  ;;  %v1086_v22 = vadd.s32 %v2694_v15, %v957_v13 }
 0x137   : > { %vm1214_vm14 = vcmp.lt.s32.totalorder %v1086_v22, 1536 }
 0x139   : > { %v456_v26 = vpop.f32.mrf.mxu0 }
 0x13a   : > { %822 = vst [vmem:[%s2644_s26 + $0x48] sm:$0xff] %v456_v26  ;;  %v1337_v29 = vsel %vm1209_vm9, %v456_v26, 0.0  ;;  %v2780_v1 = vpop.f32.mrf.mxu1  ;;  %v624_v19 = vpop.f32.mrf.mxu2  ;;  %v374_v26 = vld [vmem:[%s2596_s9 + $0x350] sm:$0xff] }
 0x13b   : > { %v1464_v31 = vadd.f32 %v1463_v25, %v1337_v29  ;;  %v1599_v32 = vmul.f32 %v1337_v29, %v1337_v29  ;;  %853 = vst [vmem:[%s2644_s26 + $0x140] sm:$0xff] %v2780_v1  ;;  %v350_v25 = vld [vmem:[%s2596_s9 + $0x290] sm:$0xff]  ;;  %746 = vmatmul.f32.gmra.mxu3 %v374_v26 }
 0x13c   : > { %503 = vmatmul.f32.gmra.mxu0 %v293_v27  ;;  %878 = vst [vmem:[%s2644_s26 + $0x208] sm:$0xff] %v624_v19  ;;  %674 = vmatmul.f32.gmra.mxu2 %v350_v25  ;;  %v958_v27 = vadd.s32 120, %v2681_v9  ;;  %v354_v19 = vld [vmem:[%s2596_s9 + $0x2b0] sm:$0xff] }
 0x13d   : > { %v1726_v35 = vadd.f32 %v1725_v30, %v1599_v32  ;;  %599 = vmatmul.f32.gmra.mxu1 %v325_v23  ;;  %v298_v30 = vld [vmem:[%s2596_s9 + $0xf0] sm:$0xff] }
 0x13e   : > { %v1087_v36 = vadd.s32 %v2694_v15, %v958_v27 }
 0x140   : > { %vm1215_vm15 = vcmp.lt.s32.totalorder %v1087_v36, 1536 }
 0x141   : > { %v459_v39 = vpop.f32.mrf.mxu0 }
 0x142   : > { %823 = vst [vmem:[%s2644_s26 + $0x50] sm:$0xff] %v459_v39  ;;  %v1338_v42 = vsel %vm1210_vm10, %v459_v39, 0.0  ;;  %v2792_v17 = vpop.f32.mrf.mxu1  ;;  %v627_v33 = vpop.f32.mrf.mxu2  ;;  %v351_v39 = vld [vmem:[%s2596_s9 + $0x298] sm:$0xff] }
 0x143   : > { %v1465_v43 = vadd.f32 %v1464_v31, %v1338_v42  ;;  %v1600_v44 = vmul.f32 %v1338_v42, %v1338_v42  ;;  %854 = vst [vmem:[%s2644_s26 + $0x148] sm:$0xff] %v2792_v17  ;;  %v959_v42 = vadd.s32 128, %v2681_v9 }
 0x144   : > { %506 = vmatmul.f32.gmra.mxu0 %v294_v40  ;;  %879 = vst [vmem:[%s2644_s26 + $0x210] sm:$0xff] %v627_v33  ;;  %v375_v40 = vld [vmem:[%s2596_s9 + $0x358] sm:$0xff]  ;;  %677 = vmatmul.f32.gmra.mxu2 %v351_v39 }
 0x145   : > { %v1727_v47 = vadd.f32 %v1726_v35, %v1600_v44  ;;  %602 = vmatmul.f32.gmra.mxu1 %v326_v37  ;;  %749 = vmatmul.f32.gmra.mxu3 %v375_v40  ;;  %v299_v44 = vld [vmem:[%s2596_s9 + $0xf8] sm:$0xff]  ;;  %v1088_v50 = vadd.s32 %v2694_v15, %v959_v42 }
 0x146   : > { %v355_v33 = vld [vmem:[%s2596_s9 + $0x2b8] sm:$0xff] }
 0x147   : > { %vm1216_vm0 = vcmp.lt.s32.totalorder %v1088_v50, 1536 }
 0x149   : > { %v462_v51 = vpop.f32.mrf.mxu0 }
 0x14a   : > { %824 = vst [vmem:[%s2644_s26 + $0x58] sm:$0xff] %v462_v51  ;;  %v1339_v54 = vsel %vm1211_vm11, %v462_v51, 0.0  ;;  %v2804_v31 = vpop.f32.mrf.mxu1  ;;  %v327_v51 = vld [vmem:[%s2596_s9 + $0x1d8] sm:$0xff] }
 0x14b   : > { %v1466_v55 = vadd.f32 %v1465_v43, %v1339_v54  ;;  %v1601_v56 = vmul.f32 %v1339_v54, %v1339_v54  ;;  %855 = vst [vmem:[%s2644_s26 + $0x150] sm:$0xff] %v2804_v31  ;;  %v352_v54 = vld [vmem:[%s2596_s9 + $0x2a0] sm:$0xff] }
 0x14c   : > { %509 = vmatmul.f32.gmra.mxu0 %v295_v52  ;;  %680 = vmatmul.f32.gmra.mxu2 %v352_v54  ;;  %v717_v54 = vpop.f32.mrf.mxu3 }
 0x14d   : > { %v1728_v59 = vadd.f32 %v1727_v47, %v1601_v56  ;;  %v630_v47 = vpop.f32.mrf.mxu2  ;;  %605 = vmatmul.f32.gmra.mxu1 %v327_v51  ;;  %v960_v56 = vadd.s32 136, %v2681_v9  ;;  %909 = vst [vmem:[%s2644_s26 + $0x300] sm:$0xff] %v717_v54 }
 0x14e   : > { %880 = vst [vmem:[%s2644_s26 + $0x218] sm:$0xff] %v630_v47  ;;  %v356_v47 = vld [vmem:[%s2596_s9 + $0x2c0] sm:$0xff] }
 0x151   : > { %v465_v63 = vpop.f32.mrf.mxu0 }
 0x152   : > { %825 = vst [vmem:[%s2644_s26 + $0x60] sm:$0xff] %v465_v63  ;;  %v1340_v2 = vsel %vm1212_vm12, %v465_v63, 0.0  ;;  %v2816_v45 = vpop.f32.mrf.mxu1  ;;  %v1089_v63 = vadd.s32 %v2694_v15, %v960_v56 }
 0x153   : > { %v1467_v4 = vadd.f32 %v1466_v55, %v1340_v2  ;;  %v1602_v6 = vmul.f32 %v1340_v2, %v1340_v2  ;;  %856 = vst [vmem:[%s2644_s26 + $0x158] sm:$0xff] %v2816_v45  ;;  %v376_v55 = vld [vmem:[%s2596_s9 + $0x360] sm:$0xff] }
 0x154   : > { %512 = vmatmul.f32.gmra.mxu0 %v296_v0  ;;  %752 = vmatmul.f32.gmra.mxu3 %v376_v55  ;;  %v328_v0 = vld [vmem:[%s2596_s9 + $0x1e0] sm:$0xff]  ;;  %vm1217_vm1 = vcmp.lt.s32.totalorder %v1089_v63, 1536 }
 0x155   : > { %v1729_v10 = vadd.f32 %v1728_v59, %v1602_v6  ;;  %v633_v60 = vpop.f32.mrf.mxu2  ;;  %608 = vmatmul.f32.gmra.mxu1 %v328_v0  ;;  %683 = vmatmul.f32.gmra.mxu2 %v353_v3  ;;  %v961_v6 = vadd.s32 144, %v2681_v9  ;;  %v720_v0 = vpop.f32.mrf.mxu3  ;;  %v382_v3 = vld [vmem:[%s2596_s9 + $0x390] sm:$0xff] }
 0x156   : > { %881 = vst [vmem:[%s2644_s26 + $0x220] sm:$0xff] %v633_v60  ;;  %v381_v60 = vld [vmem:[%s2596_s9 + $0x388] sm:$0xff] }
 0x157   : > { %910 = vst [vmem:[%s2644_s26 + $0x308] sm:$0xff] %v720_v0  ;;  %v968_v0 = vadd.s32 200, %v2681_v9 }
 0x159   : > { %v468_v14 = vpop.f32.mrf.mxu0 }
 0x15a   : > { %826 = vst [vmem:[%s2644_s26 + $0x68] sm:$0xff] %v468_v14  ;;  %v1341_v18 = vsel %vm1213_vm13, %v468_v14, 0.0  ;;  %v2827_v58 = vpop.f32.mrf.mxu1  ;;  %v1090_v14 = vadd.s32 %v2694_v15, %v961_v6 }
 0x15b   : > { %v1468_v20 = vadd.f32 %v1467_v4, %v1341_v18  ;;  %v1603_v21 = vmul.f32 %v1341_v18, %v1341_v18  ;;  %857 = vst [vmem:[%s2644_s26 + $0x160] sm:$0xff] %v2827_v58  ;;  %v377_v4 = vld [vmem:[%s2596_s9 + $0x368] sm:$0xff] }
 0x15c   : > { %515 = vmatmul.f32.gmra.mxu0 %v297_v16  ;;  %755 = vmatmul.f32.gmra.mxu3 %v377_v4  ;;  %v329_v16 = vld [vmem:[%s2596_s9 + $0x1e8] sm:$0xff]  ;;  %vm1218_vm2 = vcmp.lt.s32.totalorder %v1090_v14, 1536 }
 0x15d   : > { %v1730_v24 = vadd.f32 %v1729_v10, %v1603_v21  ;;  %v636_v11 = vpop.f32.mrf.mxu2  ;;  %611 = vmatmul.f32.gmra.mxu1 %v329_v16  ;;  %686 = vmatmul.f32.gmra.mxu2 %v354_v19  ;;  %v962_v21 = vadd.s32 152, %v2681_v9  ;;  %v360_v19 = vld [vmem:[%s2596_s9 + $0x2e0] sm:$0xff] }
 0x15e   : > { %882 = vst [vmem:[%s2644_s26 + $0x228] sm:$0xff] %v636_v11  ;;  %v359_v11 = vld [vmem:[%s2596_s9 + $0x2d8] sm:$0xff] }
 0x161   : > { %v471_v29 = vpop.f32.mrf.mxu0 }
 0x162   : > { %827 = vst [vmem:[%s2644_s26 + $0x70] sm:$0xff] %v471_v29  ;;  %v1342_v32 = vsel %vm1214_vm14, %v471_v29, 0.0  ;;  %v2838_v8 = vpop.f32.mrf.mxu1  ;;  %v1091_v29 = vadd.s32 %v2694_v15, %v962_v21 }
 0x163   : > { %v1469_v34 = vadd.f32 %v1468_v20, %v1342_v32  ;;  %v1604_v35 = vmul.f32 %v1342_v32, %v1342_v32  ;;  %858 = vst [vmem:[%s2644_s26 + $0x168] sm:$0xff] %v2838_v8  ;;  %v378_v20 = vld [vmem:[%s2596_s9 + $0x370] sm:$0xff] }
 0x164   : > { %518 = vmatmul.f32.gmra.mxu0 %v298_v30  ;;  %758 = vmatmul.f32.gmra.mxu3 %v378_v20  ;;  %v330_v30 = vld [vmem:[%s2596_s9 + $0x1f0] sm:$0xff]  ;;  %vm1219_vm3 = vcmp.lt.s32.totalorder %v1091_v29, 1536  ;;  %v384_v20 = vld [vmem:[%s2596_s9 + $0x3a0] sm:$0xff] }
 0x165   : > { %v1731_v38 = vadd.f32 %v1730_v24, %v1604_v35  ;;  %v639_v25 = vpop.f32.mrf.mxu2  ;;  %614 = vmatmul.f32.gmra.mxu1 %v330_v30  ;;  %689 = vmatmul.f32.gmra.mxu2 %v355_v33  ;;  %v963_v35 = vadd.s32 160, %v2681_v9 }
 0x166   : > { %883 = vst [vmem:[%s2644_s26 + $0x230] sm:$0xff] %v639_v25 }
 0x169   : > { %v474_v43 = vpop.f32.mrf.mxu0 }
 0x16a   : > { %828 = vst [vmem:[%s2644_s26 + $0x78] sm:$0xff] %v474_v43  ;;  %v1343_v46 = vsel %vm1215_vm15, %v474_v43, 0.0  ;;  %v2849_v23 = vpop.f32.mrf.mxu1  ;;  %v1092_v43 = vadd.s32 %v2694_v15, %v963_v35  ;;  %v386_v35 = vld [vmem:[%s2596_s9 + $0x3b0] sm:$0xff] }
 0x16b   : > { %v1470_v48 = vadd.f32 %v1469_v34, %v1343_v46  ;;  %v1605_v49 = vmul.f32 %v1343_v46, %v1343_v46  ;;  %859 = vst [vmem:[%s2644_s26 + $0x170] sm:$0xff] %v2849_v23  ;;  %v379_v34 = vld [vmem:[%s2596_s9 + $0x378] sm:$0xff] }
 0x16c   : > { %521 = vmatmul.f32.gmra.mxu0 %v299_v44  ;;  %761 = vmatmul.f32.gmra.mxu3 %v379_v34  ;;  %v331_v44 = vld [vmem:[%s2596_s9 + $0x1f8] sm:$0xff]  ;;  %vm1220_vm4 = vcmp.lt.s32.totalorder %v1092_v43, 1536  ;;  %v362_v34 = vld [vmem:[%s2596_s9 + $0x2f0] sm:$0xff] }
 0x16d   : > { %v1732_v52 = vadd.f32 %v1731_v38, %v1605_v49  ;;  %v642_v39 = vpop.f32.mrf.mxu2  ;;  %617 = vmatmul.f32.gmra.mxu1 %v331_v44  ;;  %692 = vmatmul.f32.gmra.mxu2 %v356_v47  ;;  %v387_v43 = vld [vmem:[%s2596_s9 + $0x3b8] sm:$0xff]  ;;  %v964_v44 = vadd.s32 168, %v2681_v9 }
 0x16e   : > { %884 = vst [vmem:[%s2644_s26 + $0x238] sm:$0xff] %v642_v39 }
 0x171   : > { %v477_v57 = vpop.f32.mrf.mxu0 }
 0x172   : > { %829 = vst [vmem:[%s2644_s26 + $0x80] sm:$0xff] %v477_v57  ;;  %v1344_v59 = vsel %vm1216_vm0, %v477_v57, 0.0  ;;  %v2860_v37 = vpop.f32.mrf.mxu1 }
 0x173   : > { %v1471_v61 = vadd.f32 %v1470_v48, %v1344_v59  ;;  %v1606_v62 = vmul.f32 %v1344_v59, %v1344_v59  ;;  %860 = vst [vmem:[%s2644_s26 + $0x178] sm:$0xff] %v2860_v37  ;;  %v380_v48 = vld [vmem:[%s2596_s9 + $0x380] sm:$0xff]  ;;  %v357_v59 = vld [vmem:[%s2596_s9 + $0x2c8] sm:$0xff] }
 0x174   : > { %764 = vmatmul.f32.gmra.mxu3 %v380_v48 }
 0x175   : > { %v1733_v2 = vadd.f32 %v1732_v52, %v1606_v62  ;;  %v645_v52 = vpop.f32.mrf.mxu2  ;;  %695 = vmatmul.f32.gmra.mxu2 %v357_v59  ;;  %v967_v59 = vadd.s32 192, %v2681_v9 }
 0x176   : > { %885 = vst [vmem:[%s2644_s26 + $0x240] sm:$0xff] %v645_v52 }
 0x179   : > { %v480_v7 = vpop.f32.mrf.mxu0 }
 0x17a   : > { %830 = vst [vmem:[%s2644_s26 + $0x88] sm:$0xff] %v480_v7  ;;  %v1345_v10 = vsel %vm1217_vm1, %v480_v7, 0.0  ;;  %v2870_v50 = vpop.f32.mrf.mxu1 }
 0x17b   : > { %v1472_v12 = vadd.f32 %v1471_v61, %v1345_v10  ;;  %v1607_v13 = vmul.f32 %v1345_v10, %v1345_v10  ;;  %861 = vst [vmem:[%s2644_s26 + $0x180] sm:$0xff] %v2870_v50  ;;  %v723_v10 = vpop.f32.mrf.mxu3 }
 0x17c   : > { %767 = vmatmul.f32.gmra.mxu3 %v381_v60  ;;  %911 = vst [vmem:[%s2644_s26 + $0x310] sm:$0xff] %v723_v10  ;;  %v388_v60 = vld [vmem:[%s2596_s9 + $0x3c0] sm:$0xff] }
 0x17d   : > { %v1734_v18 = vadd.f32 %v1733_v2, %v1607_v13  ;;  %v648_v63 = vpop.f32.mrf.mxu2  ;;  %v358_v2 = vld [vmem:[%s2596_s9 + $0x2d0] sm:$0xff] }
 0x17e   : > { %886 = vst [vmem:[%s2644_s26 + $0x248] sm:$0xff] %v648_v63  ;;  %698 = vmatmul.f32.gmra.mxu2 %v358_v2  ;;  %v1096_v2 = vadd.s32 %v2694_v15, %v967_v59 }
 0x180   : > { %vm1224_vm8 = vcmp.lt.s32.totalorder %v1096_v2, 1536 }
 0x181   : > { %v483_v22 = vpop.f32.mrf.mxu0 }
 0x182   : > { %831 = vst [vmem:[%s2644_s26 + $0x90] sm:$0xff] %v483_v22  ;;  %v1346_v24 = vsel %vm1218_vm2, %v483_v22, 0.0  ;;  %v2885_v62 = vpop.f32.mrf.mxu1 }
 0x183   : > { %v1473_v26 = vadd.f32 %v1472_v12, %v1346_v24  ;;  %v1608_v27 = vmul.f32 %v1346_v24, %v1346_v24  ;;  %862 = vst [vmem:[%s2644_s26 + $0x188] sm:$0xff] %v2885_v62  ;;  %v383_v12 = vld [vmem:[%s2596_s9 + $0x398] sm:$0xff] }
 0x184   : > { %770 = vmatmul.f32.gmra.mxu3 %v382_v3 }
 0x185   : > { %v1735_v32 = vadd.f32 %v1734_v18, %v1608_v27  ;;  %v651_v7 = vpop.f32.mrf.mxu2  ;;  %v726_v18 = vpop.f32.mrf.mxu3  ;;  %v385_v27 = vld [vmem:[%s2596_s9 + $0x3a8] sm:$0xff] }
 0x186   : > { %887 = vst [vmem:[%s2644_s26 + $0x250] sm:$0xff] %v651_v7  ;;  %701 = vmatmul.f32.gmra.mxu2 %v359_v11  ;;  %v969_v7 = vadd.s32 208, %v2681_v9 }
 0x187   : > { %912 = vst [vmem:[%s2644_s26 + $0x318] sm:$0xff] %v726_v18 }
 0x189   : > { %v486_v36 = vpop.f32.mrf.mxu0 }
 0x18a   : > { %832 = vst [vmem:[%s2644_s26 + $0x98] sm:$0xff] %v486_v36  ;;  %v1347_v38 = vsel %vm1219_vm3, %v486_v36, 0.0  ;;  %v2897_v6 = vpop.f32.mrf.mxu1 }
 0x18b   : > { %v1474_v40 = vadd.f32 %v1473_v26, %v1347_v38  ;;  %v1609_v42 = vmul.f32 %v1347_v38, %v1347_v38  ;;  %863 = vst [vmem:[%s2644_s26 + $0x190] sm:$0xff] %v2897_v6  ;;  %v361_v26 = vld [vmem:[%s2596_s9 + $0x2e8] sm:$0xff] }
 0x18c   : > { %773 = vmatmul.f32.gmra.mxu3 %v383_v12  ;;  %v1097_v12 = vadd.s32 %v2694_v15, %v968_v0 }
 0x18d   : > { %v1736_v46 = vadd.f32 %v1735_v32, %v1609_v42  ;;  %v654_v16 = vpop.f32.mrf.mxu2  ;;  %v729_v25 = vpop.f32.mrf.mxu3  ;;  %v363_v42 = vld [vmem:[%s2596_s9 + $0x2f8] sm:$0xff] }
 0x18e   : > { %888 = vst [vmem:[%s2644_s26 + $0x258] sm:$0xff] %v654_v16  ;;  %704 = vmatmul.f32.gmra.mxu2 %v360_v19  ;;  %vm1225_vm9 = vcmp.lt.s32.totalorder %v1097_v12, 1536  ;;  %v390_v12 = vld [vmem:[%s2596_s9 + $0x3d0] sm:$0xff] }
 0x18f   : > { %913 = vst [vmem:[%s2644_s26 + $0x320] sm:$0xff] %v729_v25  ;;  %v1098_v25 = vadd.s32 %v2694_v15, %v969_v7 }
 0x191   : > { %v489_v49 = vpop.f32.mrf.mxu0  ;;  %vm1226_vm10 = vcmp.lt.s32.totalorder %v1098_v25, 1536 }
 0x192   : > { %833 = vst [vmem:[%s2644_s26 + $0xa0] sm:$0xff] %v489_v49  ;;  %v1348_v51 = vsel %vm1220_vm4, %v489_v49, 0.0  ;;  %v2909_v14 = vpop.f32.mrf.mxu1  ;;  %v1093_v49 = vadd.s32 %v2694_v15, %v964_v44 }
 0x193   : > { %v2873_v55 = vadd.f32 %v1474_v40, %v1348_v51  ;;  %v1610_v56 = vmul.f32 %v1348_v51, %v1348_v51  ;;  %864 = vst [vmem:[%s2644_s26 + $0x198] sm:$0xff] %v2909_v14  ;;  %v966_v51 = vadd.s32 184, %v2681_v9 }
 0x194   : > { %776 = vmatmul.f32.gmra.mxu3 %v384_v20  ;;  %vm1221_vm5 = vcmp.lt.s32.totalorder %v1093_v49, 1536 }
 0x195   : > { %v2878_v57 = vadd.f32 %v1736_v46, %v1610_v56  ;;  %v657_v24 = vpop.f32.mrf.mxu2  ;;  %v732_v33 = vpop.f32.mrf.mxu3  ;;  %v965_v46 = vadd.s32 176, %v2681_v9  ;;  %v1095_v63 = vadd.s32 %v2694_v15, %v966_v51 }
 0x196   : > { %889 = vst [vmem:[%s2644_s26 + $0x260] sm:$0xff] %v657_v24  ;;  %707 = vmatmul.f32.gmra.mxu2 %v361_v26  ;;  %v971_v26 = vadd.s32 224, %v2681_v9 }
 0x197   : > { %914 = vst [vmem:[%s2644_s26 + $0x328] sm:$0xff] %v732_v33  ;;  %v1094_v56 = vadd.s32 %v2694_v15, %v965_v46  ;;  %vm1223_vm7 = vcmp.lt.s32.totalorder %v1095_v63, 1536  ;;  %v973_v46 = vadd.s32 240, %v2681_v9  ;;  %v976_v63 = vadd.s32 264, %v2681_v9 }
 0x199   : > { %v2883_v61 = vpop.f32.mrf.mxu0  ;;  %vm1222_vm6 = vcmp.lt.s32.totalorder %v1094_v56, 1536  ;;  %v1102_v7 = vadd.s32 %v2694_v15, %v973_v46 }
 0x19a   : > { %834 = vst [vmem:[%s2644_s26 + $0xa8] sm:$0xff] %v2883_v61  ;;  %v2921_v22 = vpop.f32.mrf.mxu1  ;;  %v1349_v3 = vsel %vm1221_vm5, %v2883_v61, 0.0  ;;  %v970_v61 = vadd.s32 216, %v2681_v9 }
 0x19b   : > { %865 = vst [vmem:[%s2644_s26 + $0x1a0] sm:$0xff] %v2921_v22  ;;  %v1611_v20 = vmul.f32 %v1349_v3, %v1349_v3  ;;  %vm1230_vm14 = vcmp.lt.s32.totalorder %v1102_v7, 1536  ;;  %v980_v7 = vadd.s32 296, %v2681_v9 }
 0x19c   : > { %779 = vmatmul.f32.gmra.mxu3 %v385_v27  ;;  %v389_v27 = vld [vmem:[%s2596_s9 + $0x3c8] sm:$0xff] }
 0x19d   : > { %v660_v32 = vpop.f32.mrf.mxu2  ;;  %v735_v40 = vpop.f32.mrf.mxu3 }
 0x19e   : > { %890 = vst [vmem:[%s2644_s26 + $0x268] sm:$0xff] %v660_v32  ;;  %710 = vmatmul.f32.gmra.mxu2 %v362_v34  ;;  %v1099_v34 = vadd.s32 %v2694_v15, %v970_v61 }
 0x19f   : > { %915 = vst [vmem:[%s2644_s26 + $0x330] sm:$0xff] %v735_v40 }
 0x1a0   : > { %vm1227_vm11 = vcmp.lt.s32.totalorder %v1099_v34, 1536 }
 0x1a1   : > { %v2895_v4 = vpop.f32.mrf.mxu0 }
 0x1a2   : > { %835 = vst [vmem:[%s2644_s26 + $0xb0] sm:$0xff] %v2895_v4  ;;  %v2933_v30 = vpop.f32.mrf.mxu1  ;;  %v1350_v19 = vsel %vm1222_vm6, %v2895_v4, 0.0  ;;  %v1476_v4 = vadd.f32 %v2873_v55, %v1349_v3 }
 0x1a3   : > { %866 = vst [vmem:[%s2644_s26 + $0x1a8] sm:$0xff] %v2933_v30  ;;  %v1612_v32 = vmul.f32 %v1350_v19, %v1350_v19 }
 0x1a4   : > { %782 = vmatmul.f32.gmra.mxu3 %v386_v35  ;;  %v972_v35 = vadd.s32 232, %v2681_v9 }
 0x1a5   : > { %v2949_v39 = vpop.f32.mrf.mxu2  ;;  %v738_v54 = vpop.f32.mrf.mxu3 }
 0x1a6   : > { %891 = vst [vmem:[%s2644_s26 + $0x270] sm:$0xff] %v2949_v39  ;;  %713 = vmatmul.f32.gmra.mxu2 %v363_v42  ;;  %v1477_v42 = vadd.f32 %v1476_v4, %v1350_v19  ;;  %v1101_v59 = vadd.s32 %v2694_v15, %v972_v35 }
 0x1a7   : > { %916 = vst [vmem:[%s2644_s26 + $0x338] sm:$0xff] %v738_v54 }
 0x1a8   : > { %vm1229_vm13 = vcmp.lt.s32.totalorder %v1101_v59, 1536 }
 0x1a9   : > { %v2907_v13 = vpop.f32.mrf.mxu0 }
 0x1aa   : > { %836 = vst [vmem:[%s2644_s26 + $0xb8] sm:$0xff] %v2907_v13  ;;  %v2945_v38 = vpop.f32.mrf.mxu1  ;;  %v1351_v24 = vsel %vm1223_vm7, %v2907_v13, 0.0  ;;  %v1738_v13 = vadd.f32 %v2878_v57, %v1611_v20 }
 0x1ab   : > { %867 = vst [vmem:[%s2644_s26 + $0x1b0] sm:$0xff] %v2945_v38  ;;  %v1613_v40 = vmul.f32 %v1351_v24, %v1351_v24  ;;  %v1478_v56 = vadd.f32 %v1477_v42, %v1351_v24 }
 0x1ac   : > { %785 = vmatmul.f32.gmra.mxu3 %v387_v43  ;;  %v1100_v43 = vadd.s32 %v2694_v15, %v971_v26  ;;  %v1739_v55 = vadd.f32 %v1738_v13, %v1612_v32  ;;  %v1105_v26 = vadd.s32 %v2694_v15, %v976_v63  ;;  %v978_v13 = vadd.s32 280, %v2681_v9 }
 0x1ad   : > { %v2968_v52 = vpop.f32.mrf.mxu2  ;;  %v741_v18 = vpop.f32.mrf.mxu3 }
 0x1ae   : > { %892 = vst [vmem:[%s2644_s26 + $0x278] sm:$0xff] %v2968_v52  ;;  %v1740_v0 = vadd.f32 %v1739_v55, %v1613_v40  ;;  %vm1228_vm12 = vcmp.lt.s32.totalorder %v1100_v43, 1536  ;;  %v979_v40 = vadd.s32 288, %v2681_v9  ;;  %vm1233_vm0 = vcmp.lt.s32.totalorder %v1105_v26, 1536 }
 0x1af   : > { %917 = vst [vmem:[%s2644_s26 + $0x340] sm:$0xff] %v741_v18  ;;  %v977_v18 = vadd.s32 272, %v2681_v9  ;;  %v1107_v63 = vadd.s32 %v2694_v15, %v978_v13  ;;  %v1109_v26 = vadd.s32 %v2694_v15, %v980_v7 }
 0x1b1   : > { %v2919_v21 = vpop.f32.mrf.mxu0  ;;  %v1106_v34 = vadd.s32 %v2694_v15, %v977_v18  ;;  %v982_v18 = vadd.s32 312, %v2681_v9  ;;  %vm1235_vm3 = vcmp.lt.s32.totalorder %v1107_v63, 1536  ;;  %vm1237_vm5 = vcmp.lt.s32.totalorder %v1109_v26, 1536 }
 0x1b2   : > { %837 = vst [vmem:[%s2644_s26 + $0xc0] sm:$0xff] %v2919_v21  ;;  %v2962_v48 = vpop.f32.mrf.mxu1  ;;  %v1352_v33 = vsel %vm1224_vm8, %v2919_v21, 0.0  ;;  %v989_v26 = vadd.s32 368, %v2681_v9 }
 0x1b3   : > { %868 = vst [vmem:[%s2644_s26 + $0x1b8] sm:$0xff] %v2962_v48  ;;  %v1614_v21 = vmul.f32 %v1352_v33, %v1352_v33  ;;  %v1479_v2 = vadd.f32 %v1478_v56, %v1352_v33  ;;  %vm1234_vm1 = vcmp.lt.s32.totalorder %v1106_v34, 1536 }
 0x1b4   : > { %788 = vmatmul.f32.gmra.mxu3 %v388_v60  ;;  %v975_v60 = vadd.s32 256, %v2681_v9 }
 0x1b5   : > { %v2990_v16 = vpop.f32.mrf.mxu2  ;;  %v744_v54 = vpop.f32.mrf.mxu3  ;;  %v1741_v19 = vadd.f32 %v1740_v0, %v1614_v21  ;;  %v1108_v0 = vadd.s32 %v2694_v15, %v979_v40 }
 0x1b6   : > { %893 = vst [vmem:[%s2644_s26 + $0x280] sm:$0xff] %v2990_v16  ;;  %v1104_v25 = vadd.s32 %v2694_v15, %v975_v60  ;;  %v391_v60 = vld [vmem:[%s2596_s9 + $0x3d8] sm:$0xff] }
 0x1b7   : > { %918 = vst [vmem:[%s2644_s26 + $0x348] sm:$0xff] %v744_v54  ;;  %vm1236_vm4 = vcmp.lt.s32.totalorder %v1108_v0, 1536  ;;  %v986_v0 = vadd.s32 344, %v2681_v9 }
 0x1b8   : > { %vm1232_vm15 = vcmp.lt.s32.totalorder %v1104_v25, 1536  ;;  %v1364_v7 = vsel %vm1236_vm4, %v2736_v5, 0.0 }
 0x1b9   : > { %v2931_v29 = vpop.f32.mrf.mxu0 }
 0x1ba   : > { %838 = vst [vmem:[%s2644_s26 + $0xc8] sm:$0xff] %v2931_v29  ;;  %v2985_v11 = vpop.f32.mrf.mxu1  ;;  %v1353_v51 = vsel %vm1225_vm9, %v2931_v29, 0.0 }
 0x1bb   : > { %869 = vst [vmem:[%s2644_s26 + $0x1c0] sm:$0xff] %v2985_v11  ;;  %v1615_v3 = vmul.f32 %v1353_v51, %v1353_v51  ;;  %v1480_v20 = vadd.f32 %v1479_v2, %v1353_v51 }
 0x1bc   : > { %791 = vmatmul.f32.gmra.mxu3 %v389_v27 }
 0x1bd   : > { %v3015_v57 = vpop.f32.mrf.mxu2  ;;  %v1742_v32 = vadd.f32 %v1741_v19, %v1615_v3  ;;  %v2186_v19 = vld [vmem:[%s2644_s26 + $0x100] sm:$0xff] }
 0x1be   : > { %894 = vst [vmem:[%s2644_s26 + $0x288] sm:$0xff] %v3015_v57  ;;  %v747_v43 = vpop.f32.mrf.mxu3 }
 0x1bf   : > { %919 = vst [vmem:[%s2644_s26 + $0x350] sm:$0xff] %v747_v43 }
 0x1c1   : > { %v2943_v36 = vpop.f32.mrf.mxu0 }
 0x1c2   : > { %839 = vst [vmem:[%s2644_s26 + $0xd0] sm:$0xff] %v2943_v36  ;;  %v3010_v49 = vpop.f32.mrf.mxu1  ;;  %v1354_v29 = vsel %vm1226_vm10, %v2943_v36, 0.0  ;;  %v974_v36 = vadd.s32 248, %v2681_v9 }
 0x1c3   : > { %870 = vst [vmem:[%s2644_s26 + $0x1c8] sm:$0xff] %v3010_v49  ;;  %v1616_v24 = vmul.f32 %v1354_v29, %v1354_v29  ;;  %v1481_v4 = vadd.f32 %v1480_v20, %v1354_v29 }
 0x1c4   : > { %794 = vmatmul.f32.gmra.mxu3 %v390_v12  ;;  %v1103_v51 = vadd.s32 %v2694_v15, %v974_v36  ;;  %v981_v12 = vadd.s32 304, %v2681_v9 }
 0x1c5   : > { %v1743_v46 = vadd.f32 %v1742_v32, %v1616_v24  ;;  %v2187_v32 = vld [vmem:[%s2644_s26 + $0x108] sm:$0xff] }
 0x1c6   : > { %vm1231_vm2 = vcmp.lt.s32.totalorder %v1103_v51, 1536  ;;  %v1110_v34 = vadd.s32 %v2694_v15, %v981_v12 }
 0x1c8   : > { %v750_v25 = vpop.f32.mrf.mxu3  ;;  %vm1238_vm6 = vcmp.lt.s32.totalorder %v1110_v34, 1536 }
 0x1c9   : > { %v2960_v47 = vpop.f32.mrf.mxu0  ;;  %920 = vst [vmem:[%s2644_s26 + $0x358] sm:$0xff] %v750_v25 }
 0x1ca   : > { %840 = vst [vmem:[%s2644_s26 + $0xd8] sm:$0xff] %v2960_v47  ;;  %v1355_v61 = vsel %vm1227_vm11, %v2960_v47, 0.0  ;;  %v3036_v47 = vpop.f32.mrf.mxu1 }
 0x1cb   : > { %v1617_v33 = vmul.f32 %v1355_v61, %v1355_v61  ;;  %v1482_v55 = vadd.f32 %v1481_v4, %v1355_v61  ;;  %871 = vst [vmem:[%s2644_s26 + $0x1d0] sm:$0xff] %v3036_v47  ;;  %v1360_v61 = vsel %vm1232_vm15, %v2186_v19, 0.0  ;;  %v1361_v4 = vsel %vm1233_vm0, %v2187_v32, 0.0 }
 0x1cc   : > { %797 = vmatmul.f32.gmra.mxu3 %v391_v60  ;;  %v1622_v51 = vmul.f32 %v1360_v61, %v1360_v61  ;;  %v1623_v60 = vmul.f32 %v1361_v4, %v1361_v4 }
 0x1cd   : > { %v1744_v56 = vadd.f32 %v1743_v46, %v1617_v33  ;;  %v2188_v33 = vld [vmem:[%s2644_s26 + $0x110] sm:$0xff] }
 0x1d1   : > { %v2983_v10 = vpop.f32.mrf.mxu0 }
 0x1d2   : > { %841 = vst [vmem:[%s2644_s26 + $0xe0] sm:$0xff] %v2983_v10  ;;  %v1356_v27 = vsel %vm1228_vm12, %v2983_v10, 0.0  ;;  %v3042_v10 = vpop.f32.mrf.mxu2 }
 0x1d3   : > { %v1618_v21 = vmul.f32 %v1356_v27, %v1356_v27  ;;  %895 = vst [vmem:[%s2644_s26 + $0x290] sm:$0xff] %v3042_v10  ;;  %v1483_v59 = vadd.f32 %v1482_v55, %v1356_v27  ;;  %v3058_v27 = vpop.f32.mrf.mxu1  ;;  %v1111_v55 = vadd.s32 %v2694_v15, %v982_v18 }
 0x1d4   : > { %872 = vst [vmem:[%s2644_s26 + $0x1d8] sm:$0xff] %v3058_v27 }
 0x1d5   : > { %v1745_v29 = vadd.f32 %v1744_v56, %v1618_v21  ;;  %v983_v21 = vadd.s32 320, %v2681_v9  ;;  %vm1239_vm7 = vcmp.lt.s32.totalorder %v1111_v55, 1536 }
 0x1d7   : > { %v1112_v19 = vadd.s32 %v2694_v15, %v983_v21  ;;  %v753_v32 = vpop.f32.mrf.mxu3 }
 0x1d8   : > { %921 = vst [vmem:[%s2644_s26 + $0x360] sm:$0xff] %v753_v32 }
 0x1d9   : > { %v516_v44 = vpop.f32.mrf.mxu0  ;;  %vm1240_vm8 = vcmp.lt.s32.totalorder %v1112_v19, 1536  ;;  %v990_v19 = vadd.s32 376, %v2681_v9 }
 0x1da   : > { %842 = vst [vmem:[%s2644_s26 + $0xe8] sm:$0xff] %v516_v44  ;;  %v1357_v42 = vsel %vm1229_vm13, %v516_v44, 0.0  ;;  %v3066_v40 = vpop.f32.mrf.mxu2 }
 0x1db   : > { %v1619_v44 = vmul.f32 %v1357_v42, %v1357_v42  ;;  %v1484_v2 = vadd.f32 %v1483_v59, %v1357_v42  ;;  %896 = vst [vmem:[%s2644_s26 + $0x298] sm:$0xff] %v3066_v40  ;;  %v3086_v63 = vpop.f32.mrf.mxu1 }
 0x1dc   : > { %873 = vst [vmem:[%s2644_s26 + $0x1e0] sm:$0xff] %v3086_v63 }
 0x1dd   : > { %v1746_v20 = vadd.f32 %v1745_v29, %v1619_v44  ;;  %v392_v44 = vld [vmem:[%s2596_s9 + $0x3e0] sm:$0xff] }
 0x1de   : > { %800 = vmatmul.f32.gmra.mxu3 %v392_v44 }
 0x1e1   : > { %v519_v35 = vpop.f32.mrf.mxu0 }
 0x1e2   : > { %843 = vst [vmem:[%s2644_s26 + $0xf0] sm:$0xff] %v519_v35  ;;  %v1358_v54 = vsel %vm1230_vm14, %v519_v35, 0.0  ;;  %v1362_v35 = vsel %vm1234_vm1, %v2188_v33, 0.0  ;;  %v3091_v5 = vpop.f32.mrf.mxu2  ;;  %v1626_v33 = vmul.f32 %v1364_v7, %v1364_v7 }
 0x1e3   : > { %v1620_v3 = vmul.f32 %v1358_v54, %v1358_v54  ;;  %v1485_v24 = vadd.f32 %v1484_v2, %v1358_v54  ;;  %v984_v54 = vadd.s32 328, %v2681_v9  ;;  %v1624_v29 = vmul.f32 %v1362_v35, %v1362_v35  ;;  %v2189_v2 = vld [vmem:[%s2644_s26 + $0x118] sm:$0xff]  ;;  %897 = vst [vmem:[%s2644_s26 + $0x2a0] sm:$0xff] %v3091_v5 }
 0x1e5   : > { %v1747_v42 = vadd.f32 %v1746_v20, %v1620_v3  ;;  %v1363_v3 = vsel %vm1235_vm3, %v2189_v2, 0.0  ;;  %v985_v20 = vadd.s32 336, %v2681_v9 }
 0x1e9   : > { %v522_v36 = vpop.f32.mrf.mxu0 }
 0x1ea   : > { %844 = vst [vmem:[%s2644_s26 + $0xf8] sm:$0xff] %v522_v36  ;;  %v1359_v13 = vsel %vm1231_vm2, %v522_v36, 0.0 }
 0x1eb   : > { %v1486_v43 = vadd.f32 %v1485_v24, %v1359_v13  ;;  %v1621_v46 = vmul.f32 %v1359_v13, %v1359_v13 }
 0x1ed   : > { %v1487_v56 = vadd.f32 %v1486_v43, %v1360_v61  ;;  %v1748_v59 = vadd.f32 %v1747_v42, %v1621_v46  ;;  %v1113_v61 = vadd.s32 %v2694_v15, %v984_v54  ;;  %v1366_v42 = vsel %vm1238_vm6, %v2758_v41, 0.0  ;;  %v393_v54 = vld [vmem:[%s2596_s9 + $0x3e8] sm:$0xff] }
 0x1ee   : > { %v1367_v43 = vsel %vm1239_vm7, %v2769_v53, 0.0  ;;  %v1114_v46 = vadd.s32 %v2694_v15, %v985_v20  ;;  %803 = vmatmul.f32.gmra.mxu3 %v393_v54  ;;  %v1628_v55 = vmul.f32 %v1366_v42, %v1366_v42  ;;  %v1118_v20 = vadd.s32 %v2694_v15, %v989_v26 }
 0x1ef   : > { %v1488_v12 = vadd.f32 %v1487_v56, %v1361_v4  ;;  %v1749_v18 = vadd.f32 %v1748_v59, %v1622_v51  ;;  %v1625_v4 = vmul.f32 %v1363_v3, %v1363_v3  ;;  %vm1241_vm9 = vcmp.lt.s32.totalorder %v1113_v61, 1536 }
 0x1f0   : > { %v1115_v56 = vadd.s32 %v2694_v15, %v986_v0  ;;  %v987_v59 = vadd.s32 352, %v2681_v9  ;;  %v1629_v44 = vmul.f32 %v1367_v43, %v1367_v43  ;;  %vm1242_vm10 = vcmp.lt.s32.totalorder %v1114_v46, 1536 }
 0x1f1   : > { %v1489_v24 = vadd.f32 %v1488_v12, %v1362_v35  ;;  %v1750_v36 = vadd.f32 %v1749_v18, %v1623_v60  ;;  %v1365_v35 = vsel %vm1237_vm5, %v2747_v28, 0.0  ;;  %v988_v28 = vadd.s32 360, %v2681_v9 }
 0x1f2   : > { %v1627_v41 = vmul.f32 %v1365_v35, %v1365_v35  ;;  %v1368_v60 = vsel %vm1240_vm8, %v2780_v1, 0.0  ;;  %vm1243_vm11 = vcmp.lt.s32.totalorder %v1115_v56, 1536  ;;  %v1116_v12 = vadd.s32 %v2694_v15, %v987_v59  ;;  %v3119_v1 = vpop.f32.mrf.mxu2 }
 0x1f3   : > { %v1490_v13 = vadd.f32 %v1489_v24, %v1363_v3  ;;  %v1751_v25 = vadd.f32 %v1750_v36, %v1624_v29  ;;  %v1369_v29 = vsel %vm1241_vm9, %v2792_v17, 0.0  ;;  %v1117_v18 = vadd.s32 %v2694_v15, %v988_v28  ;;  %v756_v17 = vpop.f32.mrf.mxu3  ;;  %898 = vst [vmem:[%s2644_s26 + $0x2a8] sm:$0xff] %v3119_v1 }
 0x1f4   : > { %v991_v61 = vadd.s32 384, %v2681_v9  ;;  %v1630_v0 = vmul.f32 %v1368_v60, %v1368_v60  ;;  %922 = vst [vmem:[%s2644_s26 + $0x368] sm:$0xff] %v756_v17  ;;  %v1631_v32 = vmul.f32 %v1369_v29, %v1369_v29  ;;  %vm1244_vm12 = vcmp.lt.s32.totalorder %v1116_v12, 1536 }
 0x1f5   : > { %v1491_v21 = vadd.f32 %v1490_v13, %v1364_v7  ;;  %v1752_v51 = vadd.f32 %v1751_v25, %v1625_v4  ;;  %v3112_v7 = vpop.f32.mrf.mxu1  ;;  %v1370_v4 = vsel %vm1242_vm10, %v2804_v31, 0.0  ;;  %v394_v25 = vld [vmem:[%s2596_s9 + $0x3f0] sm:$0xff]  ;;  %vm1245_vm13 = vcmp.lt.s32.totalorder %v1117_v18, 1536  ;;  %v395_v18 = vld [vmem:[%s2596_s9 + $0x3f8] sm:$0xff] }
 0x1f6   : > { %874 = vst [vmem:[%s2644_s26 + $0x1e8] sm:$0xff] %v3112_v7  ;;  %vm1246_vm14 = vcmp.lt.s32.totalorder %v1118_v20, 1536  ;;  %806 = vmatmul.f32.gmra.mxu3 %v394_v25  ;;  %v992_v46 = vadd.s32 392, %v2681_v9  ;;  %v993_v31 = vadd.s32 400, %v2681_v9  ;;  %v1632_v54 = vmul.f32 %v1370_v4, %v1370_v4 }
 0x1f7   : > { %v1492_v53 = vadd.f32 %v1491_v21, %v1365_v35  ;;  %v1753_v34 = vadd.f32 %v1752_v51, %v1626_v33  ;;  %v1371_v35 = vsel %vm1243_vm11, %v2816_v45, 0.0  ;;  %v1372_v26 = vsel %vm1244_vm12, %v2827_v58, 0.0 }
 0x1f8   : > { %v1633_v28 = vmul.f32 %v1371_v35, %v1371_v35  ;;  %v1122_v58 = vadd.s32 %v2694_v15, %v993_v31 }
 0x1f9   : > { %v1493_v2 = vadd.f32 %v1492_v53, %v1366_v42  ;;  %v1754_v3 = vadd.f32 %v1753_v34, %v1627_v41  ;;  %v1119_v42 = vadd.s32 %v2694_v15, %v990_v19  ;;  %v1373_v41 = vsel %vm1245_vm13, %v2838_v8, 0.0 }
 0x1fa   : > { %v1374_v53 = vsel %vm1246_vm14, %v2849_v23, 0.0  ;;  %v3142_v34 = vpop.f32.mrf.mxu2  ;;  %v994_v8 = vadd.s32 408, %v2681_v9  ;;  %v995_v23 = vadd.s32 416, %v2681_v9  ;;  %v1635_v20 = vmul.f32 %v1373_v41, %v1373_v41 }
 0x1fb   : > { %v1494_v24 = vadd.f32 %v1493_v2, %v1367_v43  ;;  %v1755_v36 = vadd.f32 %v1754_v3, %v1628_v55  ;;  %v1120_v43 = vadd.s32 %v2694_v15, %v991_v61  ;;  %v3144_v55 = vpop.f32.mrf.mxu3  ;;  %vm1247_vm15 = vcmp.lt.s32.totalorder %v1119_v42, 1536  ;;  %899 = vst [vmem:[%s2644_s26 + $0x2b0] sm:$0xff] %v3142_v34 }
 0x1fc   : > { %923 = vst [vmem:[%s2644_s26 + $0x370] sm:$0xff] %v3144_v55  ;;  %v1634_v2 = vmul.f32 %v1372_v26, %v1372_v26  ;;  %v1636_v17 = vmul.f32 %v1374_v53, %v1374_v53  ;;  %v1375_v19 = vsel %vm1247_vm15, %v2860_v37, 0.0  ;;  %vm1250_vm2 = vcmp.lt.s32.totalorder %v1122_v58, 1536 }
 0x1fd   : > { %v1495_v33 = vadd.f32 %v1494_v24, %v1368_v60  ;;  %v1756_v13 = vadd.f32 %v1755_v36, %v1629_v44  ;;  %v3135_v45 = vpop.f32.mrf.mxu1  ;;  %vm1248_vm0 = vcmp.lt.s32.totalorder %v1120_v43, 1536  ;;  %v1637_v43 = vmul.f32 %v1375_v19, %v1375_v19 }
 0x1fe   : > { %875 = vst [vmem:[%s2644_s26 + $0x1f0] sm:$0xff] %v3135_v45  ;;  %809 = vmatmul.f32.gmra.mxu3 %v395_v18  ;;  %v1376_v61 = vsel %vm1248_vm0, %v2870_v50, 0.0  ;;  %v998_v50 = vadd.s32 440, %v2681_v9  ;;  %v1002_v18 = vadd.s32 472, %v2681_v9 }
 0x1ff   : > { %v1496_v21 = vadd.f32 %v1495_v33, %v1369_v29  ;;  %v1757_v51 = vadd.f32 %v1756_v13, %v1630_v0  ;;  %v1121_v29 = vadd.s32 %v2694_v15, %v992_v46  ;;  %v1123_v0 = vadd.s32 %v2694_v15, %v994_v8 }
 0x200   : > { %v997_v33 = vadd.s32 432, %v2681_v9 }
 0x201   : > { %v1497_v59 = vadd.f32 %v1496_v21, %v1370_v4  ;;  %v1758_v56 = vadd.f32 %v1757_v51, %v1631_v32  ;;  %vm1249_vm1 = vcmp.lt.s32.totalorder %v1121_v29, 1536  ;;  %v1124_v32 = vadd.s32 %v2694_v15, %v995_v23 }
 0x202   : > { %v996_v4 = vadd.s32 424, %v2681_v9  ;;  %v1638_v21 = vmul.f32 %v1376_v61, %v1376_v61  ;;  %v1377_v31 = vsel %vm1249_vm1, %v2885_v62, 0.0  ;;  %vm1251_vm3 = vcmp.lt.s32.totalorder %v1123_v0, 1536 }
 0x203   : > { %v1498_v44 = vadd.f32 %v1497_v59, %v1371_v35  ;;  %v1759_v60 = vadd.f32 %v1758_v56, %v1632_v54  ;;  %v3168_v35 = vpop.f32.mrf.mxu2  ;;  %v3170_v42 = vpop.f32.mrf.mxu3  ;;  %v1378_v54 = vsel %vm1250_vm2, %v2897_v6, 0.0  ;;  %vm1252_vm4 = vcmp.lt.s32.totalorder %v1124_v32, 1536 }
 0x204   : > { %900 = vst [vmem:[%s2644_s26 + $0x2b8] sm:$0xff] %v3168_v35  ;;  %v1125_v59 = vadd.s32 %v2694_v15, %v996_v4  ;;  %v1126_v56 = vadd.s32 %v2694_v15, %v997_v33  ;;  %v1000_v29 = vadd.s32 456, %v2681_v9  ;;  %v1640_v6 = vmul.f32 %v1378_v54, %v1378_v54 }
 0x205   : > { %v1760_v3 = vadd.f32 %v1759_v60, %v1633_v28  ;;  %v1499_v12 = vadd.f32 %v1498_v44, %v1372_v26  ;;  %v3163_v37 = vpop.f32.mrf.mxu1  ;;  %924 = vst [vmem:[%s2644_s26 + $0x378] sm:$0xff] %v3170_v42  ;;  %v1639_v44 = vmul.f32 %v1377_v31, %v1377_v31  ;;  %v1379_v58 = vsel %vm1251_vm3, %v2909_v14, 0.0 }
 0x206   : > { %876 = vst [vmem:[%s2644_s26 + $0x1f8] sm:$0xff] %v3163_v37  ;;  %v1380_v8 = vsel %vm1252_vm4, %v2921_v22, 0.0  ;;  %vm1253_vm5 = vcmp.lt.s32.totalorder %v1125_v59, 1536  ;;  %vm1254_vm6 = vcmp.lt.s32.totalorder %v1126_v56, 1536  ;;  %v1641_v14 = vmul.f32 %v1379_v58, %v1379_v58 }
 0x207   : > { %v1500_v24 = vadd.f32 %v1499_v12, %v1373_v41  ;;  %v1761_v36 = vadd.f32 %v1760_v3, %v1634_v2  ;;  %v1127_v41 = vadd.s32 %v2694_v15, %v998_v50  ;;  %v1001_v12 = vadd.s32 464, %v2681_v9 }
 0x208   : > { %v1129_v22 = vadd.s32 %v2694_v15, %v1000_v29  ;;  %v1382_v0 = vsel %vm1254_vm6, %v2945_v38, 0.0  ;;  %v1003_v50 = vadd.s32 480, %v2681_v9 }
 0x209   : > { %v1501_v13 = vadd.f32 %v1500_v24, %v1374_v53  ;;  %v1762_v25 = vadd.f32 %v1761_v36, %v1635_v20  ;;  %v999_v53 = vadd.s32 448, %v2681_v9  ;;  %vm1255_vm7 = vcmp.lt.s32.totalorder %v1127_v41, 1536 }
 0x20a   : > { %v1642_v24 = vmul.f32 %v1380_v8, %v1380_v8  ;;  %v1381_v36 = vsel %vm1253_vm5, %v2933_v30, 0.0  ;;  %v1383_v32 = vsel %vm1255_vm7, %v2962_v48, 0.0  ;;  %vm1257_vm9 = vcmp.lt.s32.totalorder %v1129_v22, 1536 }
 0x20b   : > { %v1502_v51 = vadd.f32 %v1501_v13, %v1375_v19  ;;  %v1763_v46 = vadd.f32 %v1762_v25, %v1636_v17  ;;  %v1128_v3 = vadd.s32 %v2694_v15, %v999_v53  ;;  %v3190_v20 = vpop.f32.mrf.mxu2  ;;  %v3192_v17 = vpop.f32.mrf.mxu3  ;;  %v1130_v13 = vadd.s32 %v2694_v15, %v1001_v12 }
 0x20c   : > { %901 = vst [vmem:[%s2644_s26 + $0x2c0] sm:$0xff] %v3190_v20  ;;  %v1131_v25 = vadd.s32 %v2694_v15, %v1002_v18  ;;  %v1644_v30 = vmul.f32 %v1382_v0, %v1382_v0  ;;  %v1385_v59 = vsel %vm1257_vm9, %v3010_v49, 0.0  ;;  %v1132_v56 = vadd.s32 %v2694_v15, %v1003_v50 }
 0x20d   : > { %v1503_v28 = vadd.f32 %v1502_v51, %v1376_v61  ;;  %v1764_v26 = vadd.f32 %v1763_v46, %v1637_v43  ;;  %925 = vst [vmem:[%s2644_s26 + $0x380] sm:$0xff] %v3192_v17  ;;  %vm1256_vm8 = vcmp.lt.s32.totalorder %v1128_v3, 1536  ;;  %v1643_v43 = vmul.f32 %v1381_v36, %v1381_v36 }
 0x20e   : > { %v1645_v46 = vmul.f32 %v1383_v32, %v1383_v32  ;;  %v1384_v48 = vsel %vm1256_vm8, %v2985_v11, 0.0  ;;  %vm1258_vm10 = vcmp.lt.s32.totalorder %v1130_v13, 1536  ;;  %vm1259_vm11 = vcmp.lt.s32.totalorder %v1131_v25, 1536 }
 0x20f   : > { %v1504_v60 = vadd.f32 %v1503_v28, %v1377_v31  ;;  %v1765_v62 = vadd.f32 %v1764_v26, %v1638_v21  ;;  %v1007_v11 = vadd.s32 512, %v2681_v9  ;;  %v1008_v49 = vadd.s32 520, %v2681_v9 }
 0x210   : > { %v1387_v3 = vsel %vm1259_vm11, %v3058_v27, 0.0  ;;  %vm1260_vm12 = vcmp.lt.s32.totalorder %v1132_v56, 1536  ;;  %v1010_v27 = vadd.s32 536, %v2681_v9  ;;  %v1012_v56 = vadd.s32 552, %v2681_v9 }
 0x211   : > { %v1505_v23 = vadd.f32 %v1504_v60, %v1378_v54  ;;  %v1766_v2 = vadd.f32 %v1765_v62, %v1639_v44  ;;  %v1004_v54 = vadd.s32 488, %v2681_v9  ;;  %v1005_v44 = vadd.s32 496, %v2681_v9 }
 0x212   : > { %v1006_v60 = vadd.s32 504, %v2681_v9  ;;  %v1009_v62 = vadd.s32 528, %v2681_v9  ;;  %v1137_v22 = vadd.s32 %v2694_v15, %v1008_v49 }
 0x213   : > { %v1506_v19 = vadd.f32 %v1505_v23, %v1379_v58  ;;  %v1767_v61 = vadd.f32 %v1766_v2, %v1640_v6  ;;  %v3211_v28 = vpop.f32.mrf.mxu2  ;;  %v3213_v26 = vpop.f32.mrf.mxu3  ;;  %v1646_v58 = vmul.f32 %v1384_v48, %v1384_v48  ;;  %v1647_v23 = vmul.f32 %v1385_v59, %v1385_v59 }
 0x214   : > { %902 = vst [vmem:[%s2644_s26 + $0x2c8] sm:$0xff] %v3211_v28  ;;  %v1386_v2 = vsel %vm1258_vm10, %v3036_v47, 0.0  ;;  %vm1265_vm1 = vcmp.lt.s32.totalorder %v1137_v22, 1536  ;;  %v1016_v22 = vadd.s32 584, %v2681_v9 }
 0x215   : > { %v1507_v4 = vadd.f32 %v1506_v19, %v1380_v8  ;;  %v1768_v33 = vadd.f32 %v1767_v61, %v1641_v14  ;;  %926 = vst [vmem:[%s2644_s26 + $0x388] sm:$0xff] %v3213_v26  ;;  %v1133_v8 = vadd.s32 %v2694_v15, %v1004_v54  ;;  %v1134_v14 = vadd.s32 %v2694_v15, %v1005_v44 }
 0x216   : > { %v1135_v19 = vadd.s32 %v2694_v15, %v1006_v60  ;;  %v1136_v61 = vadd.s32 %v2694_v15, %v1007_v11  ;;  %v1648_v47 = vmul.f32 %v1386_v2, %v1386_v2 }
 0x217   : > { %v1508_v21 = vadd.f32 %v1507_v4, %v1381_v36  ;;  %v1769_v51 = vadd.f32 %v1768_v33, %v1642_v24  ;;  %v1138_v24 = vadd.s32 %v2694_v15, %v1009_v62  ;;  %vm1261_vm13 = vcmp.lt.s32.totalorder %v1133_v8, 1536  ;;  %v2191_v62 = vld [vmem:[%s2644_s26 + $0x208] sm:$0xff] }
 0x218   : > { %v1649_v4 = vmul.f32 %v1387_v3, %v1387_v3  ;;  %v1388_v33 = vsel %vm1260_vm12, %v3086_v63, 0.0  ;;  %vm1262_vm14 = vcmp.lt.s32.totalorder %v1134_v14, 1536  ;;  %vm1263_vm15 = vcmp.lt.s32.totalorder %v1135_v19, 1536 }
 0x219   : > { %v1509_v31 = vadd.f32 %v1508_v21, %v1382_v0  ;;  %v1770_v38 = vadd.f32 %v1769_v51, %v1643_v43  ;;  %vm1264_vm0 = vcmp.lt.s32.totalorder %v1136_v61, 1536  ;;  %v1389_v21 = vsel %vm1261_vm13, %v3112_v7, 0.0 }
 0x21a   : > { %vm1266_vm2 = vcmp.lt.s32.totalorder %v1138_v24, 1536  ;;  %v1139_v63 = vadd.s32 %v2694_v15, %v1010_v27  ;;  %v1015_v19 = vadd.s32 576, %v2681_v9  ;;  %v2193_v27 = vld [vmem:[%s2644_s26 + $0x218] sm:$0xff] }
 0x21b   : > { %v1510_v41 = vadd.f32 %v1509_v31, %v1383_v32  ;;  %v1771_v53 = vadd.f32 %v1770_v38, %v1644_v30  ;;  %v1011_v32 = vadd.s32 544, %v2681_v9  ;;  %v3237_v13 = vpop.f32.mrf.mxu2  ;;  %v3239_v25 = vpop.f32.mrf.mxu3  ;;  %v1390_v31 = vsel %vm1262_vm14, %v3135_v45, 0.0  ;;  %v2190_v45 = vld [vmem:[%s2644_s26 + $0x200] sm:$0xff] }
 0x21c   : > { %903 = vst [vmem:[%s2644_s26 + $0x2d0] sm:$0xff] %v3237_v13  ;;  %v1391_v38 = vsel %vm1263_vm15, %v3163_v37, 0.0  ;;  %v1652_v11 = vmul.f32 %v1390_v31, %v1390_v31  ;;  %v1392_v37 = vsel %vm1264_vm0, %v2190_v45, 0.0  ;;  %vm1267_vm3 = vcmp.lt.s32.totalorder %v1139_v63, 1536 }
 0x21d   : > { %v1772_v29 = vadd.f32 %v1771_v53, %v1645_v46  ;;  %v1511_v6 = vadd.f32 %v1510_v41, %v1384_v48  ;;  %927 = vst [vmem:[%s2644_s26 + $0x390] sm:$0xff] %v3239_v25  ;;  %v1650_v46 = vmul.f32 %v1388_v33, %v1388_v33  ;;  %v1140_v48 = vadd.s32 %v2694_v15, %v1011_v32 }
 0x21e   : > { %v1013_v41 = vadd.s32 560, %v2681_v9  ;;  %v1014_v53 = vadd.s32 568, %v2681_v9  ;;  %v1653_v49 = vmul.f32 %v1391_v38, %v1391_v38  ;;  %v1654_v61 = vmul.f32 %v1392_v37, %v1392_v37 }
 0x21f   : > { %v1773_v12 = vadd.f32 %v1772_v29, %v1646_v58  ;;  %v1512_v18 = vadd.f32 %v1511_v6, %v1385_v59  ;;  %v1651_v59 = vmul.f32 %v1389_v21, %v1389_v21  ;;  %v1393_v29 = vsel %vm1265_vm1, %v2191_v62, 0.0  ;;  %v2192_v6 = vld [vmem:[%s2644_s26 + $0x210] sm:$0xff] }
 0x220   : > { %v1394_v58 = vsel %vm1266_vm2, %v2192_v6, 0.0  ;;  %vm1268_vm4 = vcmp.lt.s32.totalorder %v1140_v48, 1536  ;;  %v1143_v14 = vadd.s32 %v2694_v15, %v1014_v53  ;;  %v1395_v32 = vsel %vm1267_vm3, %v2193_v27, 0.0 }
 0x221   : > { %v1774_v36 = vadd.f32 %v1773_v12, %v1647_v23  ;;  %v1513_v0 = vadd.f32 %v1512_v18, %v1386_v2  ;;  %v1141_v12 = vadd.s32 %v2694_v15, %v1012_v56  ;;  %v1142_v18 = vadd.s32 %v2694_v15, %v1013_v41  ;;  %v2195_v41 = vld [vmem:[%s2644_s26 + $0x228] sm:$0xff] }
 0x222   : > { %vm1271_vm7 = vcmp.lt.s32.totalorder %v1143_v14, 1536  ;;  %v1019_v6 = vadd.s32 608, %v2681_v9 }
 0x223   : > { %v1775_v50 = vadd.f32 %v1774_v36, %v1648_v47  ;;  %v1514_v43 = vadd.f32 %v1513_v0, %v1387_v3  ;;  %v3259_v8 = vpop.f32.mrf.mxu2  ;;  %v3261_v23 = vpop.f32.mrf.mxu3  ;;  %v1655_v0 = vmul.f32 %v1393_v29, %v1393_v29  ;;  %v1656_v47 = vmul.f32 %v1394_v58, %v1394_v58 }
 0x224   : > { %904 = vst [vmem:[%s2644_s26 + $0x2d8] sm:$0xff] %v3259_v8  ;;  %vm1269_vm5 = vcmp.lt.s32.totalorder %v1141_v12, 1536  ;;  %vm1270_vm6 = vcmp.lt.s32.totalorder %v1142_v18, 1536  ;;  %v1148_v27 = vadd.s32 %v2694_v15, %v1019_v6 }
 0x225   : > { %v1776_v51 = vadd.f32 %v1775_v50, %v1649_v4  ;;  %v1515_v30 = vadd.f32 %v1514_v43, %v1388_v33  ;;  %928 = vst [vmem:[%s2644_s26 + $0x398] sm:$0xff] %v3261_v23  ;;  %v2194_v4 = vld [vmem:[%s2644_s26 + $0x220] sm:$0xff]  ;;  %v1397_v53 = vsel %vm1269_vm5, %v2195_v41, 0.0 }
 0x226   : > { %v1396_v33 = vsel %vm1268_vm4, %v2194_v4, 0.0  ;;  %vm1276_vm12 = vcmp.lt.s32.totalorder %v1148_v27, 1536 }
 0x227   : > { %v1777_v54 = vadd.f32 %v1776_v51, %v1650_v46  ;;  %v1516_v7 = vadd.f32 %v1515_v30, %v1389_v21  ;;  %v1144_v21 = vadd.s32 %v2694_v15, %v1015_v19  ;;  %v1145_v51 = vadd.s32 %v2694_v15, %v1016_v22 }
 0x228   : > { %v1017_v30 = vadd.s32 592, %v2681_v9 }
 0x229   : > { %v1778_v44 = vadd.f32 %v1777_v54, %v1651_v59  ;;  %v1517_v60 = vadd.f32 %v1516_v7, %v1390_v31  ;;  %v1018_v31 = vadd.s32 600, %v2681_v9  ;;  %v1657_v54 = vmul.f32 %v1395_v32, %v1395_v32 }
 0x22a   : > { %v1658_v7 = vmul.f32 %v1396_v33, %v1396_v33  ;;  %vm1272_vm8 = vcmp.lt.s32.totalorder %v1144_v21, 1536  ;;  %vm1273_vm9 = vcmp.lt.s32.totalorder %v1145_v51, 1536  ;;  %v1146_v45 = vadd.s32 %v2694_v15, %v1017_v30 }
 0x22b   : > { %v1779_v2 = vadd.f32 %v1778_v44, %v1652_v11  ;;  %v1518_v3 = vadd.f32 %v1517_v60, %v1391_v38  ;;  %v3280_v38 = vpop.f32.mrf.mxu2  ;;  %v3282_v48 = vpop.f32.mrf.mxu3  ;;  %v2196_v44 = vld [vmem:[%s2644_s26 + $0x230] sm:$0xff]  ;;  %v2197_v11 = vld [vmem:[%s2644_s26 + $0x238] sm:$0xff]  ;;  %v1023_v21 = vadd.s32 640, %v2681_v9 }
 0x22c   : > { %905 = vst [vmem:[%s2644_s26 + $0x2e0] sm:$0xff] %v3280_v38  ;;  %v1398_v60 = vsel %vm1270_vm6, %v2196_v44, 0.0  ;;  %vm1274_vm10 = vcmp.lt.s32.totalorder %v1146_v45, 1536  ;;  %v1025_v45 = vadd.s32 656, %v2681_v9 }
 0x22d   : > { %v1519_v24 = vadd.f32 %v1518_v3, %v1392_v37  ;;  %v1780_v36 = vadd.f32 %v1779_v2, %v1653_v49  ;;  %v1399_v49 = vsel %vm1271_vm7, %v2197_v11, 0.0  ;;  %929 = vst [vmem:[%s2644_s26 + $0x3a0] sm:$0xff] %v3282_v48  ;;  %v1021_v2 = vadd.s32 624, %v2681_v9 }
 0x22e   : > { %v1659_v3 = vmul.f32 %v1397_v53, %v1397_v53  ;;  %v1660_v14 = vmul.f32 %v1398_v60, %v1398_v60  ;;  %v1661_v19 = vmul.f32 %v1399_v49, %v1399_v49  ;;  %v1152_v44 = vadd.s32 %v2694_v15, %v1023_v21 }
 0x22f   : > { %v1520_v50 = vadd.f32 %v1519_v24, %v1393_v29  ;;  %v1781_v43 = vadd.f32 %v1780_v36, %v1654_v61  ;;  %v1147_v29 = vadd.s32 %v2694_v15, %v1018_v31  ;;  %v2198_v61 = vld [vmem:[%s2644_s26 + $0x240] sm:$0xff]  ;;  %v2199_v24 = vld [vmem:[%s2644_s26 + $0x248] sm:$0xff]  ;;  %v1150_v4 = vadd.s32 %v2694_v15, %v1021_v2  ;;  %v2200_v31 = vld [vmem:[%s2644_s26 + $0x250] sm:$0xff] }
 0x230   : > { %v1400_v22 = vsel %vm1272_vm8, %v2198_v61, 0.0  ;;  %v1401_v36 = vsel %vm1273_vm9, %v2199_v24, 0.0  ;;  %vm1280_vm0 = vcmp.lt.s32.totalorder %v1152_v44, 1536 }
 0x231   : > { %v1521_v46 = vadd.f32 %v1520_v50, %v1394_v58  ;;  %v1782_v63 = vadd.f32 %v1781_v43, %v1655_v0  ;;  %v1020_v58 = vadd.s32 616, %v2681_v9  ;;  %vm1275_vm11 = vcmp.lt.s32.totalorder %v1147_v29, 1536 }
 0x232   : > { %v1022_v43 = vadd.s32 632, %v2681_v9  ;;  %vm1278_vm14 = vcmp.lt.s32.totalorder %v1150_v4, 1536 }
 0x233   : > { %v1522_v59 = vadd.f32 %v1521_v46, %v1395_v32  ;;  %v1783_v56 = vadd.f32 %v1782_v63, %v1656_v47  ;;  %v1149_v32 = vadd.s32 %v2694_v15, %v1020_v58  ;;  %v3308_v50 = vpop.f32.mrf.mxu3  ;;  %v1662_v46 = vmul.f32 %v1400_v22, %v1400_v22  ;;  %v2202_v58 = vld [vmem:[%s2644_s26 + $0x260] sm:$0xff] }
 0x234   : > { %930 = vst [vmem:[%s2644_s26 + $0x3a8] sm:$0xff] %v3308_v50  ;;  %v1663_v63 = vmul.f32 %v1401_v36, %v1401_v36  ;;  %v1404_v2 = vsel %vm1276_vm12, %v2202_v58, 0.0 }
 0x235   : > { %v1523_v37 = vadd.f32 %v1522_v59, %v1396_v33  ;;  %v1784_v62 = vadd.f32 %v1783_v56, %v1657_v54  ;;  %v3306_v33 = vpop.f32.mrf.mxu2  ;;  %v1402_v54 = vsel %vm1274_vm10, %v2200_v31, 0.0  ;;  %v2201_v56 = vld [vmem:[%s2644_s26 + $0x258] sm:$0xff]  ;;  %vm1277_vm13 = vcmp.lt.s32.totalorder %v1149_v32, 1536 }
 0x236   : > { %906 = vst [vmem:[%s2644_s26 + $0x2e8] sm:$0xff] %v3306_v33  ;;  %v1403_v41 = vsel %vm1275_vm11, %v2201_v56, 0.0 }
 0x237   : > { %v1524_v12 = vadd.f32 %v1523_v37, %v1397_v53  ;;  %v1785_v18 = vadd.f32 %v1784_v62, %v1658_v7  ;;  %v1151_v53 = vadd.s32 %v2694_v15, %v1022_v43  ;;  %v1664_v37 = vmul.f32 %v1402_v54, %v1402_v54 }
 0x238   : > { %v1665_v29 = vmul.f32 %v1403_v41, %v1403_v41 }
 0x239   : > { %v1525_v0 = vadd.f32 %v1524_v12, %v1398_v60  ;;  %v1786_v47 = vadd.f32 %v1785_v18, %v1659_v3  ;;  %v2203_v3 = vld [vmem:[%s2644_s26 + $0x268] sm:$0xff]  ;;  %v1406_v18 = vsel %vm1278_vm14, %v2949_v39, 0.0  ;;  %vm1279_vm15 = vcmp.lt.s32.totalorder %v1151_v53, 1536 }
 0x23a   : > { %v1405_v12 = vsel %vm1277_vm13, %v2203_v3, 0.0  ;;  %v1666_v39 = vmul.f32 %v1404_v2, %v1404_v2  ;;  %v1668_v43 = vmul.f32 %v1406_v18, %v1406_v18  ;;  %v1407_v21 = vsel %vm1279_vm15, %v2968_v52, 0.0 }
 0x23b   : > { %v1526_v51 = vadd.f32 %v1525_v0, %v1399_v49  ;;  %v1787_v30 = vadd.f32 %v1786_v47, %v1660_v14  ;;  %v1024_v49 = vadd.s32 648, %v2681_v9  ;;  %v1026_v0 = vadd.s32 664, %v2681_v9 }
 0x23c   : > { %v1027_v47 = vadd.s32 672, %v2681_v9  ;;  %v1667_v4 = vmul.f32 %v1405_v12, %v1405_v12  ;;  %v1030_v52 = vadd.s32 696, %v2681_v9  ;;  %v1669_v53 = vmul.f32 %v1407_v21, %v1407_v21 }
 0x23d   : > { %v1527_v7 = vadd.f32 %v1526_v51, %v1400_v22  ;;  %v1788_v59 = vadd.f32 %v1787_v30, %v1661_v19  ;;  %v3328_v14 = vpop.f32.mrf.mxu2  ;;  %v3330_v19 = vpop.f32.mrf.mxu3  ;;  %v1153_v24 = vadd.s32 %v2694_v15, %v1024_v49  ;;  %v1408_v51 = vsel %vm1280_vm0, %v2990_v16, 0.0 }
 0x23e   : > { %907 = vst [vmem:[%s2644_s26 + $0x2f0] sm:$0xff] %v3328_v14  ;;  %v1156_v31 = vadd.s32 %v2694_v15, %v1027_v47  ;;  %v1670_v44 = vmul.f32 %v1408_v51, %v1408_v51  ;;  %v1159_v58 = vadd.s32 %v2694_v15, %v1030_v52  ;;  %v1033_v47 = vadd.s32 720, %v2681_v9 }
 0x23f   : > { %v1528_v60 = vadd.f32 %v1527_v7, %v1401_v36  ;;  %v1789_v11 = vadd.f32 %v1788_v59, %v1662_v46  ;;  %v1154_v36 = vadd.s32 %v2694_v15, %v1025_v45  ;;  %931 = vst [vmem:[%s2644_s26 + $0x3b0] sm:$0xff] %v3330_v19  ;;  %vm1281_vm1 = vcmp.lt.s32.totalorder %v1153_v24, 1536 }
 0x240   : > { %v1029_v7 = vadd.s32 688, %v2681_v9  ;;  %v1409_v49 = vsel %vm1281_vm1, %v3015_v57, 0.0  ;;  %vm1284_vm4 = vcmp.lt.s32.totalorder %v1156_v31, 1536  ;;  %vm1287_vm7 = vcmp.lt.s32.totalorder %v1159_v58, 1536 }
 0x241   : > { %v1529_v62 = vadd.f32 %v1528_v60, %v1402_v54  ;;  %v1790_v6 = vadd.f32 %v1789_v11, %v1663_v63  ;;  %vm1282_vm2 = vcmp.lt.s32.totalorder %v1154_v36, 1536  ;;  %v1155_v63 = vadd.s32 %v2694_v15, %v1026_v0 }
 0x242   : > { %v1028_v54 = vadd.s32 680, %v2681_v9  ;;  %v1410_v45 = vsel %vm1282_vm2, %v3042_v10, 0.0  ;;  %v1671_v3 = vmul.f32 %v1409_v49, %v1409_v49  ;;  %v1162_v31 = vadd.s32 %v2694_v15, %v1033_v47 }
 0x243   : > { %v1530_v61 = vadd.f32 %v1529_v62, %v1403_v41  ;;  %v1791_v22 = vadd.f32 %v1790_v6, %v1664_v37  ;;  %vm1283_vm3 = vcmp.lt.s32.totalorder %v1155_v63, 1536  ;;  %v1158_v62 = vadd.s32 %v2694_v15, %v1029_v7 }
 0x244   : > { %v1157_v37 = vadd.s32 %v2694_v15, %v1028_v54  ;;  %v1672_v10 = vmul.f32 %v1410_v45, %v1410_v45  ;;  %v1035_v7 = vadd.s32 736, %v2681_v9  ;;  %vm1290_vm10 = vcmp.lt.s32.totalorder %v1162_v31, 1536 }
 0x245   : > { %v1792_v27 = vadd.f32 %v1791_v22, %v1665_v29  ;;  %v1531_v32 = vadd.f32 %v1530_v61, %v1404_v2  ;;  %v3347_v41 = vpop.f32.mrf.mxu2  ;;  %v3349_v16 = vpop.f32.mrf.mxu3  ;;  %v1031_v2 = vadd.s32 704, %v2681_v9  ;;  %v1411_v61 = vsel %vm1283_vm3, %v3066_v40, 0.0 }
 0x246   : > { %908 = vst [vmem:[%s2644_s26 + $0x2f8] sm:$0xff] %v3347_v41  ;;  %v1412_v22 = vsel %vm1284_vm4, %v3091_v5, 0.0  ;;  %vm1285_vm5 = vcmp.lt.s32.totalorder %v1157_v37, 1536  ;;  %vm1286_vm6 = vcmp.lt.s32.totalorder %v1158_v62, 1536  ;;  %v1040_v58 = vadd.s32 776, %v2681_v9 }
 0x247   : > { %v1532_v30 = vadd.f32 %v1531_v32, %v1405_v12  ;;  %v1793_v46 = vadd.f32 %v1792_v27, %v1666_v39  ;;  %932 = vst [vmem:[%s2644_s26 + $0x3b8] sm:$0xff] %v3349_v16  ;;  %v1160_v0 = vadd.s32 %v2694_v15, %v1031_v2  ;;  %v1034_v39 = vadd.s32 728, %v2681_v9 }
 0x248   : > { %v1673_v32 = vmul.f32 %v1411_v61, %v1411_v61  ;;  %v1674_v5 = vmul.f32 %v1412_v22, %v1412_v22 }
 0x249   : > { %v1533_v59 = vadd.f32 %v1532_v30, %v1406_v18  ;;  %v1794_v56 = vadd.f32 %v1793_v46, %v1667_v4  ;;  %v1032_v18 = vadd.s32 712, %v2681_v9  ;;  %v1415_v30 = vsel %vm1287_vm7, %v3168_v35, 0.0 }
 0x24a   : > { %vm1288_vm8 = vcmp.lt.s32.totalorder %v1160_v0, 1536  ;;  %v1163_v54 = vadd.s32 %v2694_v15, %v1034_v39  ;;  %v1169_v39 = vadd.s32 %v2694_v15, %v1040_v58 }
 0x24b   : > { %v1534_v60 = vadd.f32 %v1533_v59, %v1407_v21  ;;  %v1795_v11 = vadd.f32 %v1794_v56, %v1668_v43  ;;  %v1161_v40 = vadd.s32 %v2694_v15, %v1032_v18  ;;  %v1413_v21 = vsel %vm1285_vm5, %v3119_v1, 0.0 }
 0x24c   : > { %v1675_v59 = vmul.f32 %v1413_v21, %v1413_v21  ;;  %v1677_v1 = vmul.f32 %v1415_v30, %v1415_v30  ;;  %v1416_v35 = vsel %vm1288_vm8, %v3190_v20, 0.0  ;;  %vm1291_vm11 = vcmp.lt.s32.totalorder %v1163_v54, 1536 }
 0x24d   : > { %v1535_v6 = vadd.f32 %v1534_v60, %v1408_v51  ;;  %v1796_v29 = vadd.f32 %v1795_v11, %v1669_v53  ;;  %v3369_v27 = vpop.f32.mrf.mxu3  ;;  %v1414_v51 = vsel %vm1286_vm6, %v3142_v34, 0.0  ;;  %vm1289_vm9 = vcmp.lt.s32.totalorder %v1161_v40, 1536 }
 0x24e   : > { %933 = vst [vmem:[%s2644_s26 + $0x3c0] sm:$0xff] %v3369_v27  ;;  %v1676_v53 = vmul.f32 %v1414_v51, %v1414_v51  ;;  %v1036_v60 = vadd.s32 744, %v2681_v9  ;;  %v1417_v11 = vsel %vm1289_vm9, %v3211_v28, 0.0  ;;  %v1039_v20 = vadd.s32 768, %v2681_v9 }
 0x24f   : > { %v1536_v12 = vadd.f32 %v1535_v6, %v1409_v49  ;;  %v1797_v57 = vadd.f32 %v1796_v29, %v1670_v44  ;;  %v1164_v49 = vadd.s32 %v2694_v15, %v1035_v7  ;;  %v1037_v6 = vadd.s32 752, %v2681_v9 }
 0x250   : > { %v1038_v29 = vadd.s32 760, %v2681_v9  ;;  %v1041_v28 = vadd.s32 784, %v2681_v9  ;;  %v1679_v18 = vmul.f32 %v1417_v11, %v1417_v11  ;;  %v1168_v47 = vadd.s32 %v2694_v15, %v1039_v20 }
 0x251   : > { %v1537_v24 = vadd.f32 %v1536_v12, %v1410_v45  ;;  %v1798_v36 = vadd.f32 %v1797_v57, %v1671_v3  ;;  %v1678_v12 = vmul.f32 %v1416_v35, %v1416_v35  ;;  %v1165_v57 = vadd.s32 %v2694_v15, %v1036_v60 }
 0x252   : > { %vm1292_vm12 = vcmp.lt.s32.totalorder %v1164_v49, 1536  ;;  %v1167_v0 = vadd.s32 %v2694_v15, %v1038_v29  ;;  %v1043_v40 = vadd.s32 800, %v2681_v9  ;;  %vm1296_vm0 = vcmp.lt.s32.totalorder %v1168_v47, 1536  ;;  %v2206_v29 = vld [vmem:[%s2644_s26 + $0x310] sm:$0xff]  ;;  %v2207_v47 = vld [vmem:[%s2644_s26 + $0x318] sm:$0xff] }
 0x253   : > { %v1538_v4 = vadd.f32 %v1537_v24, %v1411_v61  ;;  %v1799_v43 = vadd.f32 %v1798_v36, %v1672_v10  ;;  %v1418_v10 = vsel %vm1290_vm10, %v3237_v13, 0.0  ;;  %v1419_v61 = vsel %vm1291_vm11, %v3259_v8, 0.0 }
 0x254   : > { %v1166_v36 = vadd.s32 %v2694_v15, %v1037_v6  ;;  %v1680_v13 = vmul.f32 %v1418_v10, %v1418_v10  ;;  %vm1293_vm13 = vcmp.lt.s32.totalorder %v1165_v57, 1536  ;;  %v1042_v8 = vadd.s32 792, %v2681_v9 }
 0x255   : > { %v1539_v46 = vadd.f32 %v1538_v4, %v1412_v22  ;;  %v1800_v63 = vadd.f32 %v1799_v43, %v1673_v32  ;;  %v3384_v45 = vpop.f32.mrf.mxu3  ;;  %v1170_v32 = vadd.s32 %v2694_v15, %v1041_v28  ;;  %vm1295_vm15 = vcmp.lt.s32.totalorder %v1167_v0, 1536 }
 0x256   : > { %934 = vst [vmem:[%s2644_s26 + $0x3c8] sm:$0xff] %v3384_v45  ;;  %vm1294_vm14 = vcmp.lt.s32.totalorder %v1166_v36, 1536  ;;  %vm1297_vm1 = vcmp.lt.s32.totalorder %v1169_v39, 1536 }
 0x257   : > { %v1540_v56 = vadd.f32 %v1539_v46, %v1413_v21  ;;  %v1801_v52 = vadd.f32 %v1800_v63, %v1674_v5  ;;  %v1681_v5 = vmul.f32 %v1419_v61, %v1419_v61  ;;  %v1420_v21 = vsel %vm1292_vm12, %v3280_v38, 0.0 }
 0x258   : > { %v1421_v63 = vsel %vm1293_vm13, %v3306_v33, 0.0  ;;  %v1682_v7 = vmul.f32 %v1420_v21, %v1420_v21  ;;  %vm1298_vm2 = vcmp.lt.s32.totalorder %v1170_v32, 1536  ;;  %v1422_v38 = vsel %vm1294_vm14, %v3328_v14, 0.0  ;;  %v2204_v14 = vld [vmem:[%s2644_s26 + $0x300] sm:$0xff] }
 0x259   : > { %v1541_v44 = vadd.f32 %v1540_v56, %v1414_v51  ;;  %v1802_v34 = vadd.f32 %v1801_v52, %v1675_v59  ;;  %v1171_v59 = vadd.s32 %v2694_v15, %v1042_v8  ;;  %v1423_v56 = vsel %vm1295_vm15, %v3347_v41, 0.0  ;;  %v2208_v32 = vld [vmem:[%s2644_s26 + $0x320] sm:$0xff] }
 0x25a   : > { %v1172_v52 = vadd.s32 %v2694_v15, %v1043_v40  ;;  %v1044_v33 = vadd.s32 808, %v2681_v9  ;;  %v1684_v49 = vmul.f32 %v1422_v38, %v1422_v38  ;;  %v1424_v41 = vsel %vm1296_vm0, %v2204_v14, 0.0 }
 0x25b   : > { %v1542_v37 = vadd.f32 %v1541_v44, %v1415_v30  ;;  %v1803_v62 = vadd.f32 %v1802_v34, %v1676_v53  ;;  %v1683_v44 = vmul.f32 %v1421_v63, %v1421_v63  ;;  %v1045_v34 = vadd.s32 816, %v2681_v9 }
 0x25c   : > { %v1426_v20 = vsel %vm1298_vm2, %v2206_v29, 0.0  ;;  %vm1299_vm3 = vcmp.lt.s32.totalorder %v1171_v59, 1536  ;;  %vm1300_vm4 = vcmp.lt.s32.totalorder %v1172_v52, 1536  ;;  %v2210_v52 = vld [vmem:[%s2644_s26 + $0x330] sm:$0xff] }
 0x25d   : > { %v1804_v2 = vadd.f32 %v1803_v62, %v1677_v1  ;;  %v1543_v3 = vadd.f32 %v1542_v37, %v1416_v35  ;;  %v3406_v51 = vpop.f32.mrf.mxu3  ;;  %v1046_v35 = vadd.s32 824, %v2681_v9  ;;  %v1685_v37 = vmul.f32 %v1423_v56, %v1423_v56  ;;  %v2205_v62 = vld [vmem:[%s2644_s26 + $0x308] sm:$0xff] }
 0x25e   : > { %935 = vst [vmem:[%s2644_s26 + $0x3d0] sm:$0xff] %v3406_v51  ;;  %v1425_v6 = vsel %vm1297_vm1, %v2205_v62, 0.0  ;;  %v1688_v0 = vmul.f32 %v1426_v20, %v1426_v20  ;;  %v1427_v39 = vsel %vm1299_vm3, %v2207_v47, 0.0 }
 0x25f   : > { %v1805_v22 = vadd.f32 %v1804_v2, %v1678_v12  ;;  %v1544_v24 = vadd.f32 %v1543_v3, %v1417_v11  ;;  %v1173_v3 = vadd.s32 %v2694_v15, %v1044_v33  ;;  %v1174_v12 = vadd.s32 %v2694_v15, %v1045_v34 }
 0x260   : > { %v1175_v57 = vadd.s32 %v2694_v15, %v1046_v35  ;;  %v1687_v36 = vmul.f32 %v1425_v6, %v1425_v6 }
 0x261   : > { %v1806_v4 = vadd.f32 %v1805_v22, %v1679_v18  ;;  %v1545_v43 = vadd.f32 %v1544_v24, %v1418_v10  ;;  %v1047_v18 = vadd.s32 832, %v2681_v9  ;;  %v1686_v10 = vmul.f32 %v1424_v41, %v1424_v41 }
 0x262   : > { %vm1301_vm5 = vcmp.lt.s32.totalorder %v1173_v3, 1536  ;;  %vm1302_vm6 = vcmp.lt.s32.totalorder %v1174_v12, 1536  ;;  %vm1303_vm7 = vcmp.lt.s32.totalorder %v1175_v57, 1536 }
 0x263   : > { %v1807_v30 = vadd.f32 %v1806_v4, %v1680_v13  ;;  %v1546_v46 = vadd.f32 %v1545_v43, %v1419_v61  ;;  %v1048_v61 = vadd.s32 840, %v2681_v9  ;;  %v1428_v4 = vsel %vm1300_vm4, %v2208_v32, 0.0 }
 0x264   : > { %v1176_v8 = vadd.s32 %v2694_v15, %v1047_v18 }
 0x265   : > { %v1808_v31 = vadd.f32 %v1807_v30, %v1681_v5  ;;  %v1547_v54 = vadd.f32 %v1546_v46, %v1420_v21  ;;  %v3424_v58 = vpop.f32.mrf.mxu3  ;;  %v1177_v40 = vadd.s32 %v2694_v15, %v1048_v61  ;;  %v1049_v5 = vadd.s32 848, %v2681_v9 }
 0x266   : > { %936 = vst [vmem:[%s2644_s26 + $0x3d8] sm:$0xff] %v3424_v58  ;;  %v1050_v46 = vadd.s32 856, %v2681_v9  ;;  %vm1304_vm8 = vcmp.lt.s32.totalorder %v1176_v8, 1536 }
 0x267   : > { %v1809_v53 = vadd.f32 %v1808_v31, %v1682_v7  ;;  %v1548_v1 = vadd.f32 %v1547_v54, %v1421_v63  ;;  %v1689_v31 = vmul.f32 %v1427_v39, %v1427_v39  ;;  %v1690_v54 = vmul.f32 %v1428_v4, %v1428_v4 }
 0x268   : > { %vm1305_vm9 = vcmp.lt.s32.totalorder %v1177_v40, 1536  ;;  %v1178_v33 = vadd.s32 %v2694_v15, %v1049_v5  ;;  %v2215_v40 = vld [vmem:[%s2644_s26 + $0x358] sm:$0xff] }
 0x269   : > { %v1810_v60 = vadd.f32 %v1809_v53, %v1683_v44  ;;  %v1549_v11 = vadd.f32 %v1548_v1, %v1422_v38  ;;  %v2209_v38 = vld [vmem:[%s2644_s26 + $0x328] sm:$0xff]  ;;  %v1430_v53 = vsel %vm1302_vm6, %v2210_v52, 0.0  ;;  %v2211_v1 = vld [vmem:[%s2644_s26 + $0x338] sm:$0xff] }
 0x26a   : > { %v1431_v44 = vsel %vm1303_vm7, %v2211_v1, 0.0  ;;  %vm1306_vm10 = vcmp.lt.s32.totalorder %v1178_v33, 1536 }
 0x26b   : > { %v1811_v28 = vadd.f32 %v1810_v60, %v1684_v49  ;;  %v1550_v2 = vadd.f32 %v1549_v11, %v1423_v56  ;;  %v1429_v56 = vsel %vm1301_vm5, %v2209_v38, 0.0  ;;  %v1179_v60 = vadd.s32 %v2694_v15, %v1050_v46 }
 0x26c   : > { %v1051_v11 = vadd.s32 864, %v2681_v9  ;;  %v1052_v49 = vadd.s32 872, %v2681_v9  ;;  %v1691_v14 = vmul.f32 %v1429_v56, %v1429_v56  ;;  %v1693_v29 = vmul.f32 %v1431_v44, %v1431_v44 }
 0x26d   : > { %v1551_v22 = vadd.f32 %v1550_v2, %v1424_v41  ;;  %v1812_v24 = vadd.f32 %v1811_v28, %v1685_v37  ;;  %v3441_v63 = vpop.f32.mrf.mxu3  ;;  %v1053_v37 = vadd.s32 880, %v2681_v9  ;;  %v2213_v2 = vld [vmem:[%s2644_s26 + $0x348] sm:$0xff]  ;;  %vm1307_vm11 = vcmp.lt.s32.totalorder %v1179_v60, 1536 }
 0x26e   : > { %937 = vst [vmem:[%s2644_s26 + $0x3e0] sm:$0xff] %v3441_v63  ;;  %v1433_v3 = vsel %vm1305_vm9, %v2213_v2, 0.0  ;;  %v1180_v18 = vadd.s32 %v2694_v15, %v1051_v11  ;;  %v1435_v5 = vsel %vm1307_vm11, %v2215_v40, 0.0 }
 0x26f   : > { %v1552_v43 = vadd.f32 %v1551_v22, %v1425_v6  ;;  %v1813_v13 = vadd.f32 %v1812_v24, %v1686_v10  ;;  %v1692_v6 = vmul.f32 %v1430_v53, %v1430_v53  ;;  %v1181_v10 = vadd.s32 %v2694_v15, %v1052_v49 }
 0x270   : > { %v1182_v61 = vadd.s32 %v2694_v15, %v1053_v37  ;;  %v1054_v24 = vadd.s32 888, %v2681_v9  ;;  %v1695_v32 = vmul.f32 %v1433_v3, %v1433_v3  ;;  %vm1308_vm12 = vcmp.lt.s32.totalorder %v1180_v18, 1536 }
 0x271   : > { %v1553_v21 = vadd.f32 %v1552_v43, %v1426_v20  ;;  %v1814_v30 = vadd.f32 %v1813_v13, %v1687_v36  ;;  %v2212_v20 = vld [vmem:[%s2644_s26 + $0x340] sm:$0xff]  ;;  %v1055_v36 = vadd.s32 896, %v2681_v9  ;;  %vm1309_vm13 = vcmp.lt.s32.totalorder %v1181_v10, 1536 }
 0x272   : > { %v1432_v28 = vsel %vm1304_vm8, %v2212_v20, 0.0  ;;  %vm1310_vm14 = vcmp.lt.s32.totalorder %v1182_v61, 1536  ;;  %v1697_v52 = vmul.f32 %v1435_v5, %v1435_v5  ;;  %v1060_v10 = vadd.s32 936, %v2681_v9 }
 0x273   : > { %v1554_v7 = vadd.f32 %v1553_v21, %v1427_v39  ;;  %v1815_v59 = vadd.f32 %v1814_v30, %v1688_v0  ;;  %v1694_v39 = vmul.f32 %v1432_v28, %v1432_v28  ;;  %v1183_v21 = vadd.s32 %v2694_v15, %v1054_v24 }
 0x274   : > { %v1184_v30 = vadd.s32 %v2694_v15, %v1055_v36  ;;  %v1061_v61 = vadd.s32 944, %v2681_v9 }
 0x275   : > { %v1555_v34 = vadd.f32 %v1554_v7, %v1428_v4  ;;  %v1816_v35 = vadd.f32 %v1815_v59, %v1689_v31  ;;  %v3462_v22 = vpop.f32.mrf.mxu3  ;;  %v2214_v4 = vld [vmem:[%s2644_s26 + $0x350] sm:$0xff]  ;;  %v1057_v7 = vadd.s32 912, %v2681_v9  ;;  %vm1311_vm15 = vcmp.lt.s32.totalorder %v1183_v21, 1536 }
 0x276   : > { %938 = vst [vmem:[%s2644_s26 + $0x3e8] sm:$0xff] %v3462_v22  ;;  %v1434_v43 = vsel %vm1306_vm10, %v2214_v4, 0.0  ;;  %vm1312_vm0 = vcmp.lt.s32.totalorder %v1184_v30, 1536  ;;  %v1063_v30 = vadd.s32 960, %v2681_v9 }
 0x277   : > { %v1556_v41 = vadd.f32 %v1555_v34, %v1429_v56  ;;  %v1817_v62 = vadd.f32 %v1816_v35, %v1690_v54  ;;  %v1056_v54 = vadd.s32 904, %v2681_v9  ;;  %v1696_v59 = vmul.f32 %v1434_v43, %v1434_v43 }
 0x278   : > { %v1438_v34 = vsel %vm1310_vm14, %v3144_v55, 0.0  ;;  %v1186_v37 = vadd.s32 %v2694_v15, %v1057_v7  ;;  %v1440_v2 = vsel %vm1312_vm0, %v3192_v17, 0.0  ;;  %v1064_v7 = vadd.s32 968, %v2681_v9 }
 0x279   : > { %v1557_v12 = vadd.f32 %v1556_v41, %v1430_v53  ;;  %v1818_v57 = vadd.f32 %v1817_v62, %v1691_v14  ;;  %v2216_v53 = vld [vmem:[%s2644_s26 + $0x360] sm:$0xff]  ;;  %v1185_v49 = vadd.s32 %v2694_v15, %v1056_v54  ;;  %v1058_v14 = vadd.s32 920, %v2681_v9 }
 0x27a   : > { %v1436_v1 = vsel %vm1308_vm12, %v2216_v53, 0.0  ;;  %v1059_v41 = vadd.s32 928, %v2681_v9  ;;  %v1700_v20 = vmul.f32 %v1438_v34, %v1438_v34  ;;  %vm1314_vm2 = vcmp.lt.s32.totalorder %v1186_v37, 1536 }
 0x27b   : > { %v1558_v0 = vadd.f32 %v1557_v12, %v1431_v44  ;;  %v1819_v47 = vadd.f32 %v1818_v57, %v1692_v6  ;;  %v2217_v44 = vld [vmem:[%s2644_s26 + $0x368] sm:$0xff]  ;;  %v1698_v62 = vmul.f32 %v1436_v1, %v1436_v1  ;;  %vm1313_vm1 = vcmp.lt.s32.totalorder %v1185_v49, 1536 }
 0x27c   : > { %v1437_v33 = vsel %vm1309_vm13, %v2217_v44, 0.0  ;;  %v1187_v57 = vadd.s32 %v2694_v15, %v1058_v14  ;;  %v1188_v18 = vadd.s32 %v2694_v15, %v1059_v41  ;;  %v1441_v4 = vsel %vm1313_vm1, %v3213_v26, 0.0 }
 0x27d   : > { %v1559_v13 = vadd.f32 %v1558_v0, %v1432_v28  ;;  %v1820_v8 = vadd.f32 %v1819_v47, %v1693_v29  ;;  %v3479_v35 = vpop.f32.mrf.mxu3  ;;  %v1699_v55 = vmul.f32 %v1437_v33, %v1437_v33  ;;  %v1439_v28 = vsel %vm1311_vm15, %v3170_v42, 0.0 }
 0x27e   : > { %939 = vst [vmem:[%s2644_s26 + $0x3f0] sm:$0xff] %v3479_v35  ;;  %v1062_v0 = vadd.s32 952, %v2681_v9  ;;  %v1701_v17 = vmul.f32 %v1439_v28, %v1439_v28  ;;  %v1702_v47 = vmul.f32 %v1440_v2, %v1440_v2  ;;  %vm1315_vm3 = vcmp.lt.s32.totalorder %v1187_v57, 1536 }
 0x27f   : > { %v1560_v46 = vadd.f32 %v1559_v13, %v1433_v3  ;;  %v1821_v31 = vadd.f32 %v1820_v8, %v1694_v39  ;;  %vm1316_vm4 = vcmp.lt.s32.totalorder %v1188_v18, 1536  ;;  %v1189_v13 = vadd.s32 %v2694_v15, %v1060_v10 }
 0x280   : > { %v1190_v8 = vadd.s32 %v2694_v15, %v1061_v61  ;;  %v1191_v21 = vadd.s32 %v2694_v15, %v1062_v0  ;;  %v1065_v53 = vadd.s32 976, %v2681_v9  ;;  %v1069_v61 = vadd.s32 1008, %v2681_v9 }
 0x281   : > { %v1561_v38 = vadd.f32 %v1560_v46, %v1434_v43  ;;  %v1822_v56 = vadd.f32 %v1821_v31, %v1695_v32  ;;  %v1442_v43 = vsel %vm1314_vm2, %v3239_v25, 0.0  ;;  %v1703_v46 = vmul.f32 %v1441_v4, %v1441_v4 }
 0x282   : > { %v1704_v26 = vmul.f32 %v1442_v43, %v1442_v43  ;;  %v1443_v25 = vsel %vm1315_vm3, %v3261_v23, 0.0  ;;  %vm1317_vm5 = vcmp.lt.s32.totalorder %v1189_v13, 1536  ;;  %vm1318_vm6 = vcmp.lt.s32.totalorder %v1190_v8, 1536 }
 0x283   : > { %v1562_v60 = vadd.f32 %v1561_v38, %v1435_v5  ;;  %v1823_v11 = vadd.f32 %v1822_v56, %v1696_v59  ;;  %v1444_v59 = vsel %vm1316_vm4, %v3282_v48, 0.0  ;;  %vm1319_vm7 = vcmp.lt.s32.totalorder %v1191_v21, 1536 }
 0x284   : > { %v1705_v44 = vmul.f32 %v1443_v25, %v1443_v25  ;;  %v1445_v23 = vsel %vm1317_vm5, %v3308_v50, 0.0  ;;  %v1446_v48 = vsel %vm1318_vm6, %v3330_v19, 0.0  ;;  %v1447_v49 = vsel %vm1319_vm7, %v3349_v16, 0.0 }
 0x285   : > { %v1824_v6 = vadd.f32 %v1823_v11, %v1697_v52  ;;  %v1563_v29 = vadd.f32 %v1562_v60, %v1436_v1  ;;  %v3494_v42 = vpop.f32.mrf.mxu3  ;;  %v1192_v52 = vadd.s32 %v2694_v15, %v1063_v30  ;;  %v1066_v1 = vadd.s32 984, %v2681_v9 }
 0x286   : > { %940 = vst [vmem:[%s2644_s26 + $0x3f8] sm:$0xff] %v3494_v42  ;;  %v1193_v60 = vadd.s32 %v2694_v15, %v1064_v7  ;;  %v1706_v11 = vmul.f32 %v1444_v59, %v1444_v59  ;;  %v1194_v41 = vadd.s32 %v2694_v15, %v1065_v53  ;;  %v1068_v16 = vadd.s32 1000, %v2681_v9 }
 0x287   : > { %v1564_v3 = vadd.f32 %v1563_v29, %v1437_v33  ;;  %v1825_v12 = vadd.f32 %v1824_v6, %v1698_v62  ;;  %vm1320_vm8 = vcmp.lt.s32.totalorder %v1192_v52, 1536  ;;  %v1195_v62 = vadd.s32 %v2694_v15, %v1066_v1 }
 0x288   : > { %v1067_v6 = vadd.s32 992, %v2681_v9  ;;  %v1707_v29 = vmul.f32 %v1445_v23, %v1445_v23  ;;  %vm1321_vm9 = vcmp.lt.s32.totalorder %v1193_v60, 1536  ;;  %v1448_v19 = vsel %vm1320_vm8, %v3369_v27, 0.0 }
 0x289   : > { %v1565_v24 = vadd.f32 %v1564_v3, %v1438_v34  ;;  %v1826_v36 = vadd.f32 %v1825_v12, %v1699_v55  ;;  %v1449_v12 = vsel %vm1321_vm9, %v3384_v45, 0.0  ;;  %vm1322_vm10 = vcmp.lt.s32.totalorder %v1194_v41, 1536 }
 0x28a   : > { %vm1323_vm11 = vcmp.lt.s32.totalorder %v1195_v62, 1536  ;;  %v1196_v57 = vadd.s32 %v2694_v15, %v1067_v6  ;;  %v1711_v27 = vmul.f32 %v1449_v12, %v1449_v12 }
 0x28b   : > { %v1566_v39 = vadd.f32 %v1565_v24, %v1439_v28  ;;  %v1827_v32 = vadd.f32 %v1826_v36, %v1700_v20  ;;  %v1708_v28 = vmul.f32 %v1446_v48, %v1446_v48  ;;  %v1070_v24 = vadd.s32 1016, %v2681_v9 }
 0x28c   : > { %v1451_v45 = vsel %vm1323_vm11, %v3424_v58, 0.0  ;;  %vm1324_vm12 = vcmp.lt.s32.totalorder %v1196_v57, 1536 }
 0x28d   : > { %v1567_v40 = vadd.f32 %v1566_v39, %v1440_v2  ;;  %v1828_v5 = vadd.f32 %v1827_v32, %v1701_v17  ;;  %v1709_v2 = vmul.f32 %v1447_v49, %v1447_v49  ;;  %v1710_v17 = vmul.f32 %v1448_v19, %v1448_v19 }
 0x28e   : > { %v1450_v39 = vsel %vm1322_vm10, %v3406_v51, 0.0  ;;  %v1199_v13 = vadd.s32 %v2694_v15, %v1070_v24  ;;  %v1452_v21 = vsel %vm1324_vm12, %v3441_v63, 0.0 }
 0x28f   : > { %v1568_v31 = vadd.f32 %v1567_v40, %v1441_v4  ;;  %v1829_v54 = vadd.f32 %v1828_v5, %v1702_v47  ;;  %v1197_v47 = vadd.s32 %v2694_v15, %v1068_v16  ;;  %v1712_v9 = vmul.f32 %v1450_v39, %v1450_v39 }
 0x290   : > { %v1713_v5 = vmul.f32 %v1451_v45, %v1451_v45  ;;  %vm1327_vm15 = vcmp.lt.s32.totalorder %v1199_v13, 1536 }
 0x291   : > { %v1569_v38 = vadd.f32 %v1568_v31, %v1442_v43  ;;  %v1830_v56 = vadd.f32 %v1829_v54, %v1703_v46  ;;  %v1198_v43 = vadd.s32 %v2694_v15, %v1069_v61  ;;  %vm1325_vm13 = vcmp.lt.s32.totalorder %v1197_v47, 1536 }
 0x292   : > { %v1453_v51 = vsel %vm1325_vm13, %v3462_v22, 0.0  ;;  %v1714_v54 = vmul.f32 %v1452_v21, %v1452_v21  ;;  %v1455_v15 = vsel %vm1327_vm15, %v3494_v42, 0.0 }
 0x293   : > { %v1570_v33 = vadd.f32 %v1569_v38, %v1443_v25  ;;  %v1831_v34 = vadd.f32 %v1830_v56, %v1704_v26  ;;  %vm1326_vm14 = vcmp.lt.s32.totalorder %v1198_v43, 1536  ;;  %v1717_v63 = vmul.f32 %v1455_v15, %v1455_v15 }
 0x294   : > { %v1454_v7 = vsel %vm1326_vm14, %v3479_v35, 0.0 }
 0x295   : > { %v1571_v37 = vadd.f32 %v1570_v33, %v1444_v59  ;;  %v1832_v14 = vadd.f32 %v1831_v34, %v1705_v44  ;;  %v1715_v59 = vmul.f32 %v1453_v51, %v1453_v51  ;;  %v1716_v52 = vmul.f32 %v1454_v7, %v1454_v7 }
 0x297   : > { %v1572_v55 = vadd.f32 %v1571_v37, %v1445_v23  ;;  %v1833_v20 = vadd.f32 %v1832_v14, %v1706_v11 }
 0x299   : > { %v1573_v50 = vadd.f32 %v1572_v55, %v1446_v48  ;;  %v1834_v3 = vadd.f32 %v1833_v20, %v1707_v29 }
 0x29b   : > { %v1574_v18 = vadd.f32 %v1573_v50, %v1447_v49  ;;  %v1835_v10 = vadd.f32 %v1834_v3, %v1708_v28 }
 0x29d   : > { %v1836_v36 = vadd.f32 %v1835_v10, %v1709_v2  ;;  %v1575_v0 = vadd.f32 %v1574_v18, %v1448_v19 }
 0x29f   : > { %v1837_v32 = vadd.f32 %v1836_v36, %v1710_v17  ;;  %v1576_v4 = vadd.f32 %v1575_v0, %v1449_v12 }
 0x2a1   : > { %v1838_v8 = vadd.f32 %v1837_v32, %v1711_v27  ;;  %v1577_v40 = vadd.f32 %v1576_v4, %v1450_v39 }
 0x2a3   : > { %v1839_v30 = vadd.f32 %v1838_v8, %v1712_v9  ;;  %v1578_v46 = vadd.f32 %v1577_v40, %v1451_v45 }
 0x2a5   : > { %v1840_v58 = vadd.f32 %v1839_v30, %v1713_v5  ;;  %v1579_v31 = vadd.f32 %v1578_v46, %v1452_v21 }
 0x2a7   : > { %v1841_v26 = vadd.f32 %v1840_v58, %v1714_v54  ;;  %v1580_v25 = vadd.f32 %v1579_v31, %v1453_v51 }
 0x2a9   : > { %v1842_v38 = vadd.f32 %v1841_v26, %v1715_v59  ;;  %v1581_v56 = vadd.f32 %v1580_v25, %v1454_v7 }
 0x2ab   : > { %v1843_v53 = vadd.f32 %v1842_v38, %v1716_v52  ;;  %v1582_v1 = vadd.f32 %v1581_v56, %v1455_v15 }
 0x2ad   : > { %v1583_v22 = vrot.slane %v1582_v1, 4  ;;  %v1844_v44 = vadd.f32 %v1843_v53, %v1717_v63 }
 0x2af   : > { %v1584_v33 = vadd.f32 %v1583_v22, %v1582_v1  ;;  %v1845_v35 = vrot.slane %v1844_v44, 4 }
 0x2b1   : > { %v1585_v42 = vrot.slane %v1584_v33, 2  ;;  %v1846_v34 = vadd.f32 %v1845_v35, %v1844_v44 }
 0x2b3   : > { %v1586_v60 = vadd.f32 %v1585_v42, %v1584_v33  ;;  %v1847_v11 = vrot.slane %v1846_v34, 2 }
 0x2b5   : > { %v1587_v23 = vrot.slane %v1586_v60, 1  ;;  %v1848_v48 = vadd.f32 %v1847_v11, %v1846_v34 }
 0x2b7   : > { %v1588_v49 = vadd.f32 %v1587_v23, %v1586_v60  ;;  %v1849_v37 = vrot.slane %v1848_v48, 1  ;;  %1867 = sbr.rel (!%p2518_p11) target bundleno = 732 (0x2dc), region = 40 }
 0x2b9   : > { %1589 = vst [vmem:[%s3652_s5] sm:$0x1] %v1588_v49  ;;  %v1850_v14 = vadd.f32 %v1849_v37, %v1848_v48 }
 0x2bb   : > { %1851 = vst [vmem:[%s3651_s25] sm:$0x1] %v1850_v14 }
 0x2bc   : > { %s3681_s8 = smov (!%p1870_p6, %s1869_s8), 128 }
 0x2bd   : > { %s2063_s7 = sshll.u32 %s3681_s8, 3 }
 0x2be   : > { %s1873_s23 = ssub.s32 1024, %s2063_s7 }
 0x2bf   : > { %s1874_s30 = sshll.u32 %s1873_s23, 4 }
 0x2c0   : > { %1875 = vsyncadd %s3654_s12, %s1874_s30  ;;  %p3551_p13 = scmp.ne.s32.totalorder %s2063_s7, 0  ;;  %s1878_s9 = scalar_lea.hbm %s3644_s2, %s2060_s29 }
 0x2c1   : > { %s1880_s14 = sshll.u32 %s2644_s26, 4  ;;  %s1882_s10 = sshll.u32 %s1878_s9, 4  ;;  %s3561_s14 = int_to_ptr.vmem [resolvable:$true] %s1880_s14  ;;  %s3563_s10 = int_to_ptr.hbm [resolvable:$true] %s1882_s10 }
 0x2c2   : > { %s3653_s23 = sshll.u32 %s3681_s8, 7  ;;  %s2287_s30 = sshra.s32 %s3561_s14, 4  ;;  %s2288_s30 = int_to_ptr.vmem [resolvable:$true] %s2287_s30 }
 0x2c3   : > { %s2289_s7 = sshrl.u32 %s3653_s23, 4  ;;  %s2436_s13 = smov [#allocation7]  }
 0x2c4   : > { %s2294_s25 = scalar_lea.vmem %s2288_s30, %s2289_s7  ;;  %s2298_s22 = scalar_lea.vmem %s2436_s13, 2048 }
 0x2c5   : > { %p2295_p2 = scmp.ne.s32.totalorder %s2288_s30, %s2294_s25  ;;  %p2300_p10 = scmp.lt.s32.totalorder %s2298_s22, %s2294_s25 }
 0x2c7   : > { %p2296_p5 = pnand %p2295_p2, %p3551_p13 }
 0x2c9   : > { %p2297_p9 = pneg %p2296_p5 }
 0x2cb   : > { %p2302_p1 = pnand %p2300_p10, %p2297_p9 }
 0x2cd   : > { %2305 = shalt.err (!%p2302_p1)
}
 0x2ce   : > { %s2306_s26 = sshra.s32 %s3563_s10, 4  ;;  %s2317_s30 = scalar_lea.hbm %s3644_s2, 1536  ;;  %s2307_s26 = int_to_ptr.hbm [resolvable:$true] %s2306_s26 }
 0x2cf   : > { %s2313_s29 = scalar_lea.hbm %s2307_s26, %s2289_s7  ;;  %p2318_p8 = scmp.lt.s32.totalorder %s2307_s26, %s3644_s2 }
 0x2d0   : > { %p2314_p0 = scmp.ne.s32.totalorder %s2307_s26, %s2313_s29  ;;  %p2319_p4 = scmp.lt.s32.totalorder %s2317_s30, %s2313_s29 }
 0x2d2   : > { %p2315_p3 = pnand %p2314_p0, %p3551_p13  ;;  %p2320_p12 = por %p2319_p4, %p2318_p8 }
 0x2d4   : > { %p2316_p7 = pneg %p2315_p3 }
 0x2d6   : > { %p2321_p6 = pnand %p2320_p12, %p2316_p7 }
 0x2d8   : > { %2324 = shalt.err (!%p2321_p6)
}
 0x2d9   : > { %s2437_s25 = smov 128   ;;  %s2438_s7 = smov 8  }
 0x2da   : > { %s3667_s13 = scalar_lea.sflag [#allocation4], %s2590_s20  ;;  %s3668_s22 = sshll.u32 %s3681_s8, 7 }
 0x2db   : > { %1888 = dma.vmem_to_hbm [thread:$0]  (%p3551_p13), %s3561_s14, %s3668_s22, %s3563_s10, %s3667_s13, %s2437_s25, %s2437_s25, %s2438_s7  }
 0x2dc PF: > { %s1894_s23 = scalar_lea.hbm %s3645_s3, %s2485_s19  ;;  %s3669_s26 = scalar_lea.vmem [#allocation8], %s2590_s20 }
 0x2dd   : > { %s1896_s29 = sshll.u32 %s3669_s26, 4  ;;  %s1898_s9 = sshll.u32 %s1894_s23, 4  ;;  %s1897_s29 = int_to_ptr.vmem [resolvable:$true] %s1896_s29  ;;  %s1899_s9 = int_to_ptr.hbm [resolvable:$true] %s1898_s9 }
 0x2de   : > { %s1907_s6 = scalar_lea.hbm %s3646_s4, %s2485_s19  ;;  %s2340_s8 = sshra.s32 %s1899_s9, 4  ;;  %s2341_s8 = int_to_ptr.hbm [resolvable:$true] %s2340_s8 }
 0x2df   : > { %s2342_s14 = scalar_lea.hbm %s2341_s8, 1  ;;  %s2346_s7 = scalar_lea.hbm %s3645_s3, 2 }
 0x2e0   : > { %p2343_p13 = scmp.ne.s32.totalorder %s2341_s8, %s2342_s14  ;;  %p2347_p9 = scmp.lt.s32.totalorder %s2341_s8, %s3645_s3 }
 0x2e1   : > { %p2348_p10 = scmp.lt.s32.totalorder %s2346_s7, %s2342_s14 }
 0x2e2   : > { %p2344_p2 = pnand %p2343_p13, %p2518_p11 }
 0x2e3   : > { %p2349_p1 = por %p2348_p10, %p2347_p9 }
 0x2e4   : > { %p2345_p5 = pneg %p2344_p2 }
 0x2e6   : > { %p2350_p0 = pnand %p2349_p1, %p2345_p5 }
 0x2e8   : > { %2353 = shalt.err (!%p2350_p0)
}
 0x2e9   : > { %2125 = dma.vmem_to_hbm [thread:$0]  (%p2518_p11), %s1897_s29, 16, %s1899_s9, %s3541_s11  }
 0x2ea   : > { %s3670_s0 = scalar_lea.vmem [#allocation10], %s2590_s20  ;;  %s1911_s5 = sshll.u32 %s1907_s6, 4  ;;  %s1912_s5 = int_to_ptr.hbm [resolvable:$true] %s1911_s5 }
 0x2eb   : > { %s1909_s19 = sshll.u32 %s3670_s0, 4  ;;  %s2368_s12 = sshra.s32 %s1912_s5, 4  ;;  %s1910_s19 = int_to_ptr.vmem [resolvable:$true] %s1909_s19  ;;  %s2369_s12 = int_to_ptr.hbm [resolvable:$true] %s2368_s12 }
 0x2ec   : > { %s2370_s23 = scalar_lea.hbm %s2369_s12, 1  ;;  %s2374_s8 = scalar_lea.hbm %s3646_s4, 2 }
 0x2ed   : > { %p2371_p3 = scmp.ne.s32.totalorder %s2369_s12, %s2370_s23  ;;  %p2375_p4 = scmp.lt.s32.totalorder %s2369_s12, %s3646_s4 }
 0x2ee   : > { %p2376_p12 = scmp.lt.s32.totalorder %s2374_s8, %s2370_s23 }
 0x2ef   : > { %p2372_p7 = pnand %p2371_p3, %p2518_p11 }
 0x2f0   : > { %p2377_p6 = por %p2376_p12, %p2375_p4 }
 0x2f1   : > { %p2373_p8 = pneg %p2372_p7 }
 0x2f3   : > { %p2378_p13 = pnand %p2377_p6, %p2373_p8 }
 0x2f5   : > { %2381 = shalt.err (!%p2378_p13)
}
 0x2f6   : > { %2126 = dma.vmem_to_hbm [thread:$0]  (%p2518_p11), %s1910_s19, 16, %s1912_s5, %s3541_s11  }
 0x2f7 PF: > { %s1923_s20 = sand.u32 1, %s2416_s15   ;;  %p3671_p2 = scmp.ne.s32.totalorder %s3659_s28, 0 }
 0x2f8   : > { %p3672_p5 = scmp.ge.s32.totalorder %s2428_s18, 2  ;;  %s1924_s29 = scalar_lea.sflag [#allocation4], %s1923_s20 }
 0x2fa   : > { %p2135_p9 = pnand %p3672_p5, %p3671_p2 }
 0x2fc   : > { %p2136_p10 = pneg %p2135_p9 }
 0x2fe   : > { %2407 = dma.done.wait (%p2136_p10), %s1924_s29, 16384  }
 0x2ff   : > { %2409 = vsyncadd (%p2136_p10), %s1924_s29, 4294950912  ;;  %s3673_s9 = sadd.s32 4294967294, %s2428_s18  }
 0x300   : > { %s1933_s6 = sand.u32 1, %s3673_s9  }
 0x301   : > { %s1934_s25 = scalar_lea.sflag [#allocation9], %s1933_s6 }
 0x302   : > { %2411 = dma.done.wait (%p2136_p10), %s1934_s25, 32  }
 0x303   : > { %2413 = vsyncadd (%p2136_p10), %s1934_s25, 4294967264  ;;  %p22_p11 = scmp.ge.s32.totalorder %s2489_s21, 4   ;;  %s3674_s15 = smov %s2420_s16 }
 0x304   : > { %s3675_s16 = smov %s2424_s17  ;;  %s3676_s17 = smov %s2501_s24 }
 0x305   : > { %s3677_s18 = smov %s2489_s21  ;;  %24 = sbr.rel (!%p22_p11) target bundleno = 10 (0xa), region = 109 }
 0x30a   :  { %1948 = vsyncpa [#allocation3], 1 }
 0x30b   :  { %1950 = vsyncpa [#allocation3 + $0x1], 1 }
 0x30c   :  { %1951 = vsyncpa [#allocation6], 1 }
 0x30d   :  { %1952 = vsyncpa [#allocation4], 1 }
 0x30e   :  { %1954 = vsyncpa [#allocation4 + $0x1], 1 }
 0x30f   :  { %1955 = vsyncpa [#allocation9], 1 }
 0x310   :  { %1957 = vsyncpa [#allocation9 + $0x1], 1 }

</bundles_post_ra>
